<compile_context>
chip_gen: v7x
topology: tpu7x:2x2x1
jax: 0.10.0
libtpu: 0.0.40
codegen_flags: <defaults>
</compile_context>

<pallas_src>
import functools

import jax
import jax.numpy as jnp
from jax.experimental import pallas as pl
from jax.experimental.pallas import tpu as pltpu


def frcnn_comat_kernel(
    x_ref, ycen_ref, ycent_ref,
    w_x_ref, b_ref, repk_ref, repc_ref, em_wg_ref, bg_ref, w_e_ref,
    out_ref, *, num_cls_p1, inv_two_var,
):
    f32 = jnp.float32
    bf16 = jnp.bfloat16

    x = x_ref[...]                                                  # (TN, D) bf16

    # (1) fused heads: [cls | bbox | x-part of cls_enc | x-part of bbox_enc | 0]
    #     packed into a single lane-dense 128-wide slab (+ all biases).
    xw = jnp.dot(x, w_x_ref[...], preferred_element_type=f32) + b_ref[...]

    # (2) gaussian weights over the y-center bins, N(0, 0.3), L1-normalized.
    #     Constant log-pdf terms dropped: they cancel after normalization.
    dist = ycent_ref[...] - ycen_ref[...]                           # (TN, K)
    gw = jnp.exp(-(dist * dist) * inv_two_var)
    gw = gw * pl.reciprocal(
        jnp.maximum(jnp.sum(gw, axis=1, keepdims=True), 1e-12), approx=True)

    # (3) softmax over the class scores (packed cols [0, C+1)); torch .detach()
    #     has no forward effect.
    scores = xw[:, 0:num_cls_p1]
    e = jnp.exp(scores - jnp.max(scores, axis=1, keepdims=True))
    ms = e * pl.reciprocal(jnp.sum(e, axis=1, keepdims=True), approx=True)

    # (4) weighted[n, k*(C+1)+c] = gw[n,k] * ms[n,c], built with two tiny 0/1
    #     replication matmuls (avoids unaligned lane reshapes/concats).
    gw_rep = jnp.dot(gw.astype(bf16), repk_ref[...], preferred_element_type=f32)
    ms_til = jnp.dot(ms.astype(bf16), repc_ref[...], preferred_element_type=f32)
    weighted = (gw_rep * ms_til).astype(bf16)                       # (TN, K*(C+1))

    # (5) fused graph mixing + graph_fc (W_cls bias column folded into em_wg)
    #     + ReLU -> enc features, 512 lanes.
    enc = jnp.maximum(
        jnp.dot(weighted, em_wg_ref[...], preferred_element_type=f32) + bg_ref[...],
        0.0)

    # (6) enc-side of the enc heads.  Columns of w_e that belong to the plain
    #     heads are zero, so this add leaves scores/deltas untouched.
    out_ref[...] = xw + jnp.dot(enc.astype(bf16), w_e_ref[...],
                                preferred_element_type=f32)


def pack_params(wc, bc, wb, bb, wce, bce, wbe, bbe, wg, bg, co_mats, ycent,
                gauss_scale=0.3):
    """One-time parameter packing (would live in model init)."""
    Cp1, D = wc.shape
    B = wb.shape[0]
    Gout = wg.shape[0]
    nbins = co_mats.shape[0]
    out_w = max(128, ((2 * (Cp1 + B) + 127) // 128) * 128)          # lane-dense slab

    # fused "x-side" weights -> (D, out_w): [Wc^T | Wb^T | Wce_x^T | Wbe_x^T | 0]
    head_x = jnp.concatenate(
        [wc.T, wb.T, wce[:, Gout:].T, wbe[:, Gout:].T], axis=1)
    w_x = jnp.pad(head_x, ((0, 0), (0, out_w - head_x.shape[1])))
    # fused "enc-side" weights -> (Gout, out_w): [0 | 0 | Wce_e^T | Wbe_e^T | 0]
    head_e = jnp.concatenate(
        [jnp.zeros((Gout, Cp1 + B), jnp.float32), wce[:, :Gout].T, wbe[:, :Gout].T],
        axis=1)
    w_e = jnp.pad(head_e, ((0, 0), (0, out_w - head_e.shape[1])))
    b_all = jnp.concatenate([bc, bb, bce, bbe]).reshape(1, -1)
    b_all = jnp.pad(b_all, ((0, 0), (0, out_w - b_all.shape[1])))

    # em_wg = reshape(co_mats @ [W_cls | b_cls], (K*(C+1), D+1)) @ W_graph^T
    w_classifier = jnp.concatenate([wc, bc.reshape(Cp1, 1)], axis=1)   # (C+1, D+1)
    em = jnp.einsum("kab,bd->kad", co_mats, w_classifier)              # (K, C+1, D+1)
    em_wg = em.reshape(nbins * Cp1, D + 1) @ wg.T                      # (K*(C+1), Gout)

    # 0/1 replication matrices: gw -> repeat each bin (C+1) times,
    #                           ms -> tile nbins times.
    j = jnp.arange(nbins * Cp1)
    repk = (j[None, :] // Cp1 == jnp.arange(nbins)[:, None]).astype(jnp.bfloat16)
    repc = (j[None, :] % Cp1 == jnp.arange(Cp1)[:, None]).astype(jnp.bfloat16)

    return dict(
        ycent=ycent.reshape(1, nbins).astype(jnp.float32),
        w_x=w_x.astype(jnp.bfloat16),
        b_all=b_all.astype(jnp.float32),
        repk=repk, repc=repc,
        em_wg=em_wg.astype(jnp.bfloat16),
        bg=bg.reshape(1, Gout).astype(jnp.float32),
        w_e=w_e.astype(jnp.bfloat16),
        num_cls_p1=int(Cp1), box_out=int(B), out_w=int(out_w),
        gauss_scale=float(gauss_scale),
    )


def fast_rcnn_comat_forward(x_flat, ycen_norm, kp, tile_n=128):
    N, D = x_flat.shape
    Cp1, B, out_w = kp["num_cls_p1"], kp["box_out"], kp["out_w"]

    # Pad N to a tile multiple (real FastRCNN proposal counts vary per batch).
    pad = (-N) % tile_n
    if pad:
        x_flat = jnp.pad(x_flat, ((0, pad), (0, 0)))
        ycen_norm = jnp.pad(ycen_norm, ((0, pad), (0, 0)))
    Np = N + pad

    x16 = x_flat.astype(jnp.bfloat16)
    grid = (Np // tile_n,)

    def row_spec(d):
        return pl.BlockSpec((tile_n, d), lambda i: (i, 0))

    def full_spec(arr):
        return pl.BlockSpec(arr.shape, lambda i, _nd=arr.ndim: (0,) * _nd)

    ordered = [kp["ycent"], kp["w_x"], kp["b_all"], kp["repk"], kp["repc"],
               kp["em_wg"], kp["bg"], kp["w_e"]]

    kern = functools.partial(
        frcnn_comat_kernel,
        num_cls_p1=Cp1,
        inv_two_var=float(1.0 / (2.0 * kp["gauss_scale"] ** 2)),
    )

    packed = pl.pallas_call(
        kern,
        grid=grid,
        in_specs=[row_spec(D), row_spec(1)] + [full_spec(a) for a in ordered],
        out_specs=row_spec(out_w),
        out_shape=jax.ShapeDtypeStruct((Np, out_w), jnp.float32),
        compiler_params=pltpu.CompilerParams(dimension_semantics=("parallel",)),
    )(x16, ycen_norm, *ordered)

    packed = packed[:N]
    scores = packed[:, 0:Cp1]
    deltas = packed[:, Cp1:Cp1 + B]
    scores_enc = packed[:, Cp1 + B:2 * Cp1 + B]
    deltas_enc = packed[:, 2 * Cp1 + B:2 * (Cp1 + B)]
    return scores, deltas, scores_enc, deltas_enc


def reference_forward(x, ycen, params):
    """Pure-JAX f32 reference mirroring the torch forward."""
    wc, bc, wb, bb, wce, bce, wbe, bbe, wg, bg, co_mats, ycent = params
    scores = x @ wc.T + bc
    deltas = x @ wb.T + bb
    scale = 0.3
    dist = ycent[None, :] - ycen                                   # (N, K)
    logp = -(dist ** 2) / (2.0 * scale ** 2) - jnp.log(scale) \
        - 0.5 * jnp.log(2.0 * jnp.pi)
    wts = jnp.exp(logp)
    gw = wts / jnp.maximum(jnp.sum(jnp.abs(wts), axis=1, keepdims=True), 1e-12)
    ms = jax.nn.softmax(scores, axis=1)
    w_classifier = jnp.concatenate([wc, bc.reshape(-1, 1)], axis=1)
    em = jnp.einsum("kab,bd->kad", co_mats, w_classifier)
    emsw = jnp.einsum("nk,nc,kcd->nd", gw, ms, em)
    enc = jax.nn.relu(emsw @ wg.T + bg)
    enc_feat = jnp.concatenate([enc, x], axis=1)
    scores_enc = enc_feat @ wce.T + bce
    deltas_enc = enc_feat @ wbe.T + bbe
    return scores, deltas, scores_enc, deltas_enc


if __name__ == "__main__":
    key = jax.random.PRNGKey(0)
    keys = jax.random.split(key, 12)

    num_classes = 9
    box_dim = 4
    cls_agnostic_bbox_reg = False
    num_bbox_reg_classes = 1 if cls_agnostic_bbox_reg else num_classes
    Cp1 = num_classes + 1                     # 10
    B = num_bbox_reg_classes * box_dim        # 36
    D = 128                                   # flattened ROI feature dim (8*4*4)
    Gout = 512                                # graph_output_size
    nbins = 10                                # y-center bins / co_mats leading dim

    # --- deterministic parameter init (mirrors the torch __init__ shapes) ---
    wc = 0.01 * jax.random.normal(keys[0], (Cp1, D), jnp.float32)
    bc = jnp.zeros((Cp1,), jnp.float32)
    wb = 0.001 * jax.random.normal(keys[1], (B, D), jnp.float32)
    bb = jnp.zeros((B,), jnp.float32)
    wce = 0.01 * jax.random.normal(keys[2], (Cp1, Gout + D), jnp.float32)
    bce = jnp.zeros((Cp1,), jnp.float32)
    wbe = 0.001 * jax.random.normal(keys[3], (B, Gout + D), jnp.float32)
    bbe = jnp.zeros((B,), jnp.float32)
    wg = 0.01 * jax.random.normal(keys[4], (Gout, D + 1), jnp.float32)
    bg = jnp.zeros((Gout,), jnp.float32)
    # co-occurrence matrices (as the pickle path would provide: (K, C+1, C+1))
    co_mats = jax.random.uniform(keys[5], (nbins, Cp1, Cp1), dtype=jnp.float32)
    ycent = 0.05 + 0.1 * jnp.arange(nbins, dtype=jnp.float32)

    # --- synthetic inputs: 2 images x 128 proposals, pooled feats (N, 8, 4, 4) ---
    n_per_image = [128, 128]
    N = sum(n_per_image)
    x = jax.random.normal(keys[6], (N, 8, 4, 4), jnp.float32)
    x_flat = x.reshape(N, -1)

    image_sizes = [(480.0, 640.0), (512.0, 512.0)]
    ycen_list = []
    for i, n_i in enumerate(n_per_image):
        rois = jax.random.uniform(keys[7 + i], (n_i, 4), jnp.float32, 0.0, 400.0)
        # TODO(synk): the original torch code divides the y-center by
        # image_size[1]; kept as-is to preserve the reference semantics.
        ycen = (rois[:, 1] + rois[:, 3]) / 2.0 / image_sizes[i][1]
        ycen_list.append(ycen)
    ycen_norm = jnp.concatenate(ycen_list).reshape(N, 1)

    kp = pack_params(wc, bc, wb, bb, wce, bce, wbe, bbe, wg, bg, co_mats, ycent)

    outs = fast_rcnn_comat_forward(x_flat, ycen_norm, kp, tile_n=128)
    outs = jax.block_until_ready(outs)
    scores, deltas, scores_enc, deltas_enc = outs
    assert scores.shape == (N, Cp1) and deltas.shape == (N, B)
    assert scores_enc.shape == (N, Cp1) and deltas_enc.shape == (N, B)

    refs = reference_forward(
        x_flat, ycen_norm,
        (wc, bc, wb, bb, wce, bce, wbe, bbe, wg, bg, co_mats, ycent))
    for o, r in zip(outs, refs):
        err = float(jnp.max(jnp.abs(o - r)))
        assert err < 1.5e-2, f"max abs err {err}"

    print("KERNEL_OK")
</pallas_src>

<mosaic_0001>
module attributes {stable_mosaic.version = 11 : i64} {
  func.func @frcnn_comat_kernel(%arg0: i32, %arg1: memref<128x128xbf16, #tpu.memory_space<vmem>>, %arg2: memref<128x1xf32, #tpu.memory_space<vmem>>, %arg3: memref<1x10xf32, #tpu.memory_space<vmem>>, %arg4: memref<128x128xbf16, #tpu.memory_space<vmem>>, %arg5: memref<1x128xf32, #tpu.memory_space<vmem>>, %arg6: memref<10x100xbf16, #tpu.memory_space<vmem>>, %arg7: memref<10x100xbf16, #tpu.memory_space<vmem>>, %arg8: memref<100x512xbf16, #tpu.memory_space<vmem>>, %arg9: memref<1x512xf32, #tpu.memory_space<vmem>>, %arg10: memref<512x128xbf16, #tpu.memory_space<vmem>>, %arg11: memref<128x128xf32, #tpu.memory_space<vmem>>) attributes {dimension_semantics = [#tpu.dimension_semantics<parallel>], iteration_bounds = array<i64: 2>, scalar_prefetch = 0 : i64, scratch_operands = 0 : i64, tpu.core_type = #tpu.core_type<tc>, window_params = [{transform_indices = @transform_0, window_bounds = array<i64: 128, 128>}, {transform_indices = @transform_1, window_bounds = array<i64: 128, 1>}, {pipeline_mode = #tpu.pipeline_mode<synchronous>, transform_indices = @transform_2, window_bounds = array<i64: 1, 10>}, {pipeline_mode = #tpu.pipeline_mode<synchronous>, transform_indices = @transform_3, window_bounds = array<i64: 128, 128>}, {pipeline_mode = #tpu.pipeline_mode<synchronous>, transform_indices = @transform_4, window_bounds = array<i64: 1, 128>}, {pipeline_mode = #tpu.pipeline_mode<synchronous>, transform_indices = @transform_5, window_bounds = array<i64: 10, 100>}, {pipeline_mode = #tpu.pipeline_mode<synchronous>, transform_indices = @transform_6, window_bounds = array<i64: 10, 100>}, {pipeline_mode = #tpu.pipeline_mode<synchronous>, transform_indices = @transform_7, window_bounds = array<i64: 100, 512>}, {pipeline_mode = #tpu.pipeline_mode<synchronous>, transform_indices = @transform_8, window_bounds = array<i64: 1, 512>}, {pipeline_mode = #tpu.pipeline_mode<synchronous>, transform_indices = @transform_9, window_bounds = array<i64: 512, 128>}, {transform_indices = @transform_10, window_bounds = array<i64: 128, 128>}]} {
    %c0 = arith.constant 0 : index
    %c0_0 = arith.constant 0 : index
    %0 = vector.load %arg1[%c0, %c0_0] : memref<128x128xbf16, #tpu.memory_space<vmem>>, vector<128x128xbf16>
    %c0_1 = arith.constant 0 : index
    %c0_2 = arith.constant 0 : index
    %1 = vector.load %arg4[%c0_1, %c0_2] : memref<128x128xbf16, #tpu.memory_space<vmem>>, vector<128x128xbf16>
    %cst = arith.constant dense<0.000000e+00> : vector<128x128xf32>
    %2 = tpu.matmul %0, %1, %cst {dimension_numbers = #tpu.dot_dimension_numbers<[1], [0], [0], [1], [0, 0, 1, 1], [], []>} : vector<128x128xbf16>, vector<128x128xbf16>, vector<128x128xf32> -> vector<128x128xf32>
    %c0_3 = arith.constant 0 : index
    %c0_4 = arith.constant 0 : index
    %3 = vector.load %arg5[%c0_3, %c0_4] : memref<1x128xf32, #tpu.memory_space<vmem>>, vector<1x128xf32>
    %4 = vector.broadcast %3 : vector<1x128xf32> to vector<128x128xf32>
    %5 = arith.addf %2, %4 : vector<128x128xf32>
    %c0_5 = arith.constant 0 : index
    %c0_6 = arith.constant 0 : index
    %6 = vector.load %arg3[%c0_5, %c0_6] : memref<1x10xf32, #tpu.memory_space<vmem>>, vector<1x10xf32>
    %c0_7 = arith.constant 0 : index
    %c0_8 = arith.constant 0 : index
    %7 = vector.load %arg2[%c0_7, %c0_8] : memref<128x1xf32, #tpu.memory_space<vmem>>, vector<128x1xf32>
    %8 = vector.broadcast %6 : vector<1x10xf32> to vector<128x10xf32>
    %9 = vector.broadcast %7 : vector<128x1xf32> to vector<128x10xf32>
    %10 = arith.subf %8, %9 : vector<128x10xf32>
    %11 = arith.mulf %10, %10 : vector<128x10xf32>
    %cst_9 = arith.constant 0.000000e+00 : f32
    %12 = vector.broadcast %cst_9 : f32 to vector<128x10xf32>
    %13 = arith.subf %12, %11 : vector<128x10xf32>
    %cst_10 = arith.constant 5.55555534 : f32
    %14 = vector.broadcast %cst_10 : f32 to vector<128x10xf32>
    %15 = arith.mulf %13, %14 : vector<128x10xf32>
    %16 = math.exp %15 : vector<128x10xf32>
    %cst_11 = arith.constant dense<0.000000e+00> : vector<128xf32>
    %17 = vector.multi_reduction <add>, %16, %cst_11 [1] : vector<128x10xf32> to vector<128xf32>
    %18 = vector.shape_cast %17 : vector<128xf32> to vector<128x1xf32>
    %cst_12 = arith.constant 9.99999996E-13 : f32
    %19 = vector.broadcast %cst_12 : f32 to vector<128x1xf32>
    %20 = arith.maximumf %18, %19 : vector<128x1xf32>
    %21 = tpu.reciprocal %20 {approx = true} : vector<128x1xf32> -> vector<128x1xf32>
    %22 = vector.broadcast %21 : vector<128x1xf32> to vector<128x10xf32>
    %23 = arith.mulf %16, %22 : vector<128x10xf32>
    %24 = vector.extract_strided_slice %5 {offsets = [0, 0], sizes = [128, 10], strides = [1, 1]} : vector<128x128xf32> to vector<128x10xf32>
    %cst_13 = arith.constant dense<0xFF800000> : vector<128xf32>
    %25 = vector.multi_reduction <maximumf>, %24, %cst_13 [1] : vector<128x10xf32> to vector<128xf32>
    %26 = vector.shape_cast %25 : vector<128xf32> to vector<128x1xf32>
    %27 = vector.broadcast %26 : vector<128x1xf32> to vector<128x10xf32>
    %28 = arith.subf %24, %27 : vector<128x10xf32>
    %29 = math.exp %28 : vector<128x10xf32>
    %cst_14 = arith.constant dense<0.000000e+00> : vector<128xf32>
    %30 = vector.multi_reduction <add>, %29, %cst_14 [1] : vector<128x10xf32> to vector<128xf32>
    %31 = vector.shape_cast %30 : vector<128xf32> to vector<128x1xf32>
    %32 = tpu.reciprocal %31 {approx = true} : vector<128x1xf32> -> vector<128x1xf32>
    %33 = vector.broadcast %32 : vector<128x1xf32> to vector<128x10xf32>
    %34 = arith.mulf %29, %33 : vector<128x10xf32>
    %35 = arith.truncf %23 : vector<128x10xf32> to vector<128x10xbf16>
    %c0_15 = arith.constant 0 : index
    %c0_16 = arith.constant 0 : index
    %36 = vector.load %arg6[%c0_15, %c0_16] : memref<10x100xbf16, #tpu.memory_space<vmem>>, vector<10x100xbf16>
    %cst_17 = arith.constant dense<0.000000e+00> : vector<128x100xf32>
    %37 = tpu.matmul %35, %36, %cst_17 {dimension_numbers = #tpu.dot_dimension_numbers<[1], [0], [0], [1], [0, 0, 1, 1], [], []>} : vector<128x10xbf16>, vector<10x100xbf16>, vector<128x100xf32> -> vector<128x100xf32>
    %38 = arith.truncf %34 : vector<128x10xf32> to vector<128x10xbf16>
    %c0_18 = arith.constant 0 : index
    %c0_19 = arith.constant 0 : index
    %39 = vector.load %arg7[%c0_18, %c0_19] : memref<10x100xbf16, #tpu.memory_space<vmem>>, vector<10x100xbf16>
    %cst_20 = arith.constant dense<0.000000e+00> : vector<128x100xf32>
    %40 = tpu.matmul %38, %39, %cst_20 {dimension_numbers = #tpu.dot_dimension_numbers<[1], [0], [0], [1], [0, 0, 1, 1], [], []>} : vector<128x10xbf16>, vector<10x100xbf16>, vector<128x100xf32> -> vector<128x100xf32>
    %41 = arith.mulf %37, %40 : vector<128x100xf32>
    %42 = arith.truncf %41 : vector<128x100xf32> to vector<128x100xbf16>
    %c0_21 = arith.constant 0 : index
    %c0_22 = arith.constant 0 : index
    %43 = vector.load %arg8[%c0_21, %c0_22] : memref<100x512xbf16, #tpu.memory_space<vmem>>, vector<100x512xbf16>
    %cst_23 = arith.constant dense<0.000000e+00> : vector<128x512xf32>
    %44 = tpu.matmul %42, %43, %cst_23 {dimension_numbers = #tpu.dot_dimension_numbers<[1], [0], [0], [1], [0, 0, 1, 1], [], []>} : vector<128x100xbf16>, vector<100x512xbf16>, vector<128x512xf32> -> vector<128x512xf32>
    %c0_24 = arith.constant 0 : index
    %c0_25 = arith.constant 0 : index
    %45 = vector.load %arg9[%c0_24, %c0_25] : memref<1x512xf32, #tpu.memory_space<vmem>>, vector<1x512xf32>
    %46 = vector.broadcast %45 : vector<1x512xf32> to vector<128x512xf32>
    %47 = arith.addf %44, %46 : vector<128x512xf32>
    %cst_26 = arith.constant 0.000000e+00 : f32
    %48 = vector.broadcast %cst_26 : f32 to vector<128x512xf32>
    %49 = arith.maximumf %47, %48 : vector<128x512xf32>
    %50 = arith.truncf %49 : vector<128x512xf32> to vector<128x512xbf16>
    %c0_27 = arith.constant 0 : index
    %c0_28 = arith.constant 0 : index
    %51 = vector.load %arg10[%c0_27, %c0_28] : memref<512x128xbf16, #tpu.memory_space<vmem>>, vector<512x128xbf16>
    %cst_29 = arith.constant dense<0.000000e+00> : vector<128x128xf32>
    %52 = tpu.matmul %50, %51, %cst_29 {dimension_numbers = #tpu.dot_dimension_numbers<[1], [0], [0], [1], [0, 0, 1, 1], [], []>} : vector<128x512xbf16>, vector<512x128xbf16>, vector<128x128xf32> -> vector<128x128xf32>
    %53 = arith.addf %5, %52 : vector<128x128xf32>
    %c0_30 = arith.constant 0 : index
    %c0_31 = arith.constant 0 : index
    %54 = vector.load %arg11[%c0_30, %c0_31] : memref<128x128xf32, #tpu.memory_space<vmem>>, vector<128x128xf32>
    tpu.vector_store %arg11[%c0_30, %c0_31], %53 {strides = array<i32>} : memref<128x128xf32, #tpu.memory_space<vmem>>, vector<128x128xf32>,
    return
  }
  func.func @transform_0(%arg0: i32) -> (i32, i32) {
    %c0_i32 = arith.constant 0 : i32
    %c0_i32_0 = arith.constant 0 : i32
    return %arg0, %c0_i32 : i32, i32
  }
  func.func @transform_1(%arg0: i32) -> (i32, i32) {
    %c0_i32 = arith.constant 0 : i32
    %c0_i32_0 = arith.constant 0 : i32
    return %arg0, %c0_i32 : i32, i32
  }
  func.func @transform_2(%arg0: i32) -> (i32, i32) {
    %c0_i32 = arith.constant 0 : i32
    %c0_i32_0 = arith.constant 0 : i32
    %c0_i32_1 = arith.constant 0 : i32
    return %c0_i32, %c0_i32_0 : i32, i32
  }
  func.func @transform_3(%arg0: i32) -> (i32, i32) {
    %c0_i32 = arith.constant 0 : i32
    %c0_i32_0 = arith.constant 0 : i32
    %c0_i32_1 = arith.constant 0 : i32
    return %c0_i32, %c0_i32_0 : i32, i32
  }
  func.func @transform_4(%arg0: i32) -> (i32, i32) {
    %c0_i32 = arith.constant 0 : i32
    %c0_i32_0 = arith.constant 0 : i32
    %c0_i32_1 = arith.constant 0 : i32
    return %c0_i32, %c0_i32_0 : i32, i32
  }
  func.func @transform_5(%arg0: i32) -> (i32, i32) {
    %c0_i32 = arith.constant 0 : i32
    %c0_i32_0 = arith.constant 0 : i32
    %c0_i32_1 = arith.constant 0 : i32
    return %c0_i32, %c0_i32_0 : i32, i32
  }
  func.func @transform_6(%arg0: i32) -> (i32, i32) {
    %c0_i32 = arith.constant 0 : i32
    %c0_i32_0 = arith.constant 0 : i32
    %c0_i32_1 = arith.constant 0 : i32
    return %c0_i32, %c0_i32_0 : i32, i32
  }
  func.func @transform_7(%arg0: i32) -> (i32, i32) {
    %c0_i32 = arith.constant 0 : i32
    %c0_i32_0 = arith.constant 0 : i32
    %c0_i32_1 = arith.constant 0 : i32
    return %c0_i32, %c0_i32_0 : i32, i32
  }
  func.func @transform_8(%arg0: i32) -> (i32, i32) {
    %c0_i32 = arith.constant 0 : i32
    %c0_i32_0 = arith.constant 0 : i32
    %c0_i32_1 = arith.constant 0 : i32
    return %c0_i32, %c0_i32_0 : i32, i32
  }
  func.func @transform_9(%arg0: i32) -> (i32, i32) {
    %c0_i32 = arith.constant 0 : i32
    %c0_i32_0 = arith.constant 0 : i32
    %c0_i32_1 = arith.constant 0 : i32
    return %c0_i32, %c0_i32_0 : i32, i32
  }
  func.func @transform_10(%arg0: i32) -> (i32, i32) {
    %c0_i32 = arith.constant 0 : i32
    %c0_i32_0 = arith.constant 0 : i32
    return %arg0, %c0_i32 : i32, i32
  }
}

</mosaic_0001>

<bundles_post_ra>
// kernel: tpu_custom_call.1
= control target key start
LH: loop header
LB: loop body
LE: loop exit
PB: predicated region body
PF: predicated region fallthrough
CT: control target
= control target key end

     0   :  { %15 = vsyncpa [#allocation3], 0  ;;  %s4308_s0 = inlined_call_operand.hbm [shape: bf16[256,128], index: 0, kind: input, shape index: {}]   ;;  %s4309_s1 = inlined_call_operand.vmem [shape: f32[256,1], index: 1, kind: input, shape index: {}]   ;;  %s4310_s2 = inlined_call_operand.vmem [shape: f32[1,10], index: 2, kind: input, shape index: {}]   ;;  %s4311_s3 = inlined_call_operand.hbm [shape: bf16[128,128], index: 3, kind: input, shape index: {}]   ;;  %s4312_s4 = inlined_call_operand.vmem [shape: f32[1,128], index: 4, kind: input, shape index: {}]   ;;  %s4313_s5 = inlined_call_operand.vmem [shape: bf16[10,100], index: 5, kind: input, shape index: {}]   ;;  %s4314_s6 = inlined_call_operand.vmem [shape: bf16[10,100], index: 6, kind: input, shape index: {}]   ;;  %s4315_s7 = inlined_call_operand.hbm [shape: bf16[100,512], index: 7, kind: input, shape index: {}]   ;;  %s4316_s8 = inlined_call_operand.vmem [shape: f32[1,512], index: 8, kind: input, shape index: {}]   ;;  %s4317_s9 = inlined_call_operand.vmem [shape: bf16[512,128], index: 9, kind: input, shape index: {}]   ;;  %s4318_s10 = inlined_call_operand.hbm [shape: f32[256,128], index: 10, kind: output, shape index: {}]  }
   0x1   :  { %17 = vsyncpa [#allocation3 + $0x1], 0 }
   0x2   :  { %18 = vsyncpa [#allocation6], 0 }
   0x3   :  { %19 = vsyncpa [#allocation4], 0 }
   0x4   :  { %21 = vsyncpa [#allocation4 + $0x1], 0  ;;  %s3463_s13 = smov 0   ;;  %s3465_s14 = smov 0  }
   0x5   :  { %s3467_s15 = smov 0   ;;  %s3469_s16 = smov 0  }
   0x6 LB: > { %4330 = sst [smem:[#allocation12_spill]] %s3383_s13  ;;  %s3484_s17 = sadd.s32 4294967295, %s3395_s16   ;;  %s3395_s16 = sphi %s3469_s16, %s4357_s16   ;;  %s3391_s15 = sphi %s3467_s15, %s4356_s15   ;;  %s3387_s14 = sphi %s3465_s14, %s4355_s14   ;;  %s3383_s13 = sphi %s3463_s13, %s4354_s13  }
   0x7   : > { %s2577_s18 = sadd.s32 4294967294, %s3395_s16   ;;  %p47_p0 = scmp.ne.s32.totalorder %s3387_s14, %s3383_s13 }
   0x8   : > { %p4319_p1 = scmp.eq.s32.totalorder %s3484_s17, 0  ;;  %p271_p3 = scmp.eq.s32.totalorder %s2577_s18, 1 }
   0x9   : > { %p2578_p5 = scmp.ge.s32.totalorder %s3395_s16, 1  ;;  %p278_p7 = scmp.lt.s32.totalorder %s3395_s16, 3 }
   0xa   : > { %p3493_p4 = por %p4319_p1, %p47_p0  ;;  %p3498_p6 = por %p271_p3, %p47_p0 }
   0xb   : > { %p3503_p8 = pnand %p2578_p5, %p278_p7  ;;  %s3397_s22 = smov [#allocation5]  }
   0xc   : > { %s4331_s19 = scalar_select %p3493_p4, 1, 0 }
   0xd   : > { %s4332_s20 = scalar_select %p3498_p6, 1, 0 }
   0xe   : > { %s293_s23 = sshll.u32 %s3397_s22, 4  ;;  %p2957_p9 = pneg %p3503_p8  ;;  %s3507_s23 = int_to_ptr.vmem [resolvable:$true] %s293_s23 }
   0xf   : > { %4333 = sst [smem:[#allocation13_spill]] %s4332_s20  ;;  %s3398_s25 = smov [#allocation7]  }
  0x10   : > { %p3514_p11 = pnand %p2957_p9, %p4319_p1  ;;  %s315_s26 = sshll.u32 %s3398_s25, 4  ;;  %s3518_s26 = int_to_ptr.vmem [resolvable:$true] %s315_s26 }
  0x11   : > { %s3239_s29 = scalar_lea.hbm %s4311_s3, 1024 }
  0x12   : > { %p3240_p12 = scmp.ne.s32.totalorder %s4311_s3, %s3239_s29  ;;  %p3241_p13 = pneg %p3514_p11 }
  0x13   : > { %p3246_p5 = scmp.lt.u32.totalorder %s3239_s29, %s4311_s3 }
  0x14   : > { %p3242_p0 = pnand %p3241_p13, %p3240_p12 }
  0x16   : > { %p3243_p3 = pneg %p3242_p0 }
  0x18   : > { %p3248_p7 = pnand %p3246_p5, %p3243_p3 }
  0x1a   : > { %3251 = shalt.err (!%p3248_p7)
}
  0x1b   : > { %s3252_s22 = scalar_lea.vmem %s3507_s23, 1024  ;;  %p3260_p2 = scmp.lt.s32.totalorder %s3507_s23, %s3507_s23 }
  0x1c   : > { %p3253_p9 = scmp.ne.s32.totalorder %s3507_s23, %s3252_s22  ;;  %p3261_p12 = scmp.lt.s32.totalorder %s3252_s22, %s3252_s22 }
  0x1e   : > { %p3255_p10 = pnand %p3253_p9, %p3241_p13  ;;  %p3262_p0 = por %p3261_p12, %p3260_p2 }
  0x20   : > { %p3256_p1 = pneg %p3255_p10 }
  0x22   : > { %p3263_p6 = pnand %p3262_p0, %p3256_p1 }
  0x24   : > { %3266 = shalt.err (!%p3263_p6)
}
  0x25   : > { %s4322_s25 = smov 64   ;;  %s4323_s27 = smov 4  }
  0x26   : > { %2960 = dma.hbm_to_vmem [thread:$0]  (!%p3514_p11), %s4311_s3, 1024, %s3507_s23, [#allocation6], %s4322_s25, %s4322_s25, %s4323_s27  }
  0x27   : > { %s3267_s12 = scalar_lea.hbm %s4315_s7, 3328 }
  0x28   : > { %p3268_p1 = scmp.ne.s32.totalorder %s4315_s7, %s3267_s12  ;;  %p3274_p10 = scmp.lt.u32.totalorder %s3267_s12, %s4315_s7 }
  0x2a   : > { %p3270_p2 = pnand %p3268_p1, %p3241_p13 }
  0x2c   : > { %p3271_p6 = pneg %p3270_p2 }
  0x2e   : > { %p3276_p3 = pnand %p3274_p10, %p3271_p6 }
  0x30   : > { %3279 = shalt.err (!%p3276_p3)
}
  0x31   : > { %s3280_s23 = scalar_lea.vmem %s3518_s26, 3328  ;;  %p3288_p12 = scmp.lt.s32.totalorder %s3518_s26, %s3518_s26 }
  0x32   : > { %p3281_p5 = scmp.ne.s32.totalorder %s3518_s26, %s3280_s23  ;;  %p3289_p0 = scmp.lt.s32.totalorder %s3280_s23, %s3280_s23 }
  0x34   : > { %p3283_p7 = pnand %p3281_p5, %p3241_p13  ;;  %p3290_p1 = por %p3289_p0, %p3288_p12 }
  0x36   : > { %p3284_p9 = pneg %p3283_p7 }
  0x38   : > { %p3291_p2 = pnand %p3290_p1, %p3284_p9 }
  0x3a   : > { %3294 = shalt.err (!%p3291_p2)
}
  0x3b   : > { %s3401_s13 = smov 256   ;;  %s3402_s20 = smov 16  }
  0x3c   : > { %2963 = dma.hbm_to_vmem [thread:$0]  (!%p3514_p11), %s4315_s7, 3328, %s3518_s26, [#allocation6], %s3401_s13, %s3401_s13, %s3402_s20  }
  0x3d   : > { %s3576_s30 = sadd.s32 1, %s3395_s16   ;;  %s34_s12 = sadd.s32 1, %s3391_s15 }
  0x3e   : > { %s31_s11 = ssub.s32 %s3395_s16, %s3576_s30  ;;  %p41_p6 = scmp.ne.s32.totalorder %s3391_s15, %s3387_s14 }
  0x3f   : > { %p32_p13 = scmp.eq.s32.totalorder %s31_s11, 0  ;;  %p42_p10 = scmp.eq.s32.totalorder %s3395_s16, 0 }
  0x40   : > { %p4336_p5 = scmp.eq.s32.totalorder %s3484_s17, 1  ;;  %p2974_p9 = scmp.lt.s32.totalorder %s3395_s16, 2 }
  0x41   : > { %s3585_s18 = scalar_select %p32_p13, %s3391_s15, %s34_s12  }
  0x42   : > { %p43_p3 = por %p42_p10, %p41_p6  ;;  %p3589_p7 = por %p4336_p5, %p41_p6 }
  0x43   : > { %s335_s24 = sand.u32 1, %s3391_s15   ;;  %s2711_s26 = sshll.u32 %s3395_s16, 10 }
  0x44   : > { %s4337_s22 = scalar_select %p3589_p7, 1, 0 }
  0x45   : > { %s2582_s23 = sshll.u32 %s335_s24, 6  ;;  %s3599_s28 = scalar_lea.hbm %s4308_s0, %s2711_s26 }
  0x46   : > { %s339_s29 = scalar_lea.vmem [#allocation2], %s2582_s23  ;;  %p3603_p11 = pnand %p2974_p9, %p43_p3 }
  0x47   : > { %s346_s11 = sshll.u32 %s339_s29, 4  ;;  %s3607_s25 = scalar_lea.sflag [#allocation3], %s335_s24  ;;  %s3601_s11 = int_to_ptr.vmem [resolvable:$true] %s346_s11 }
  0x48   : > { %s3295_s27 = scalar_lea.hbm %s3599_s28, 1024  ;;  %p3297_p0 = pneg %p3603_p11 }
  0x49   : > { %p3296_p12 = scmp.ne.s32.totalorder %s3599_s28, %s3295_s27  ;;  %s3300_s13 = scalar_lea.hbm %s4308_s0, 2048 }
  0x4a   : > { %p3301_p13 = scmp.lt.u32.totalorder %s3599_s28, %s4308_s0  ;;  %p3302_p6 = scmp.lt.u32.totalorder %s3300_s13, %s3295_s27 }
  0x4b   : > { %p3298_p1 = pnand %p3297_p0, %p3296_p12  ;;  %p3304_p3 = scmp.lt.u32.totalorder %s3295_s27, %s3599_s28 }
  0x4c   : > { %p3303_p10 = por %p3302_p6, %p3301_p13 }
  0x4d   : > { %p3299_p2 = pneg %p3298_p1 }
  0x4e   : > { %p3305_p5 = por %p3304_p3, %p3303_p10 }
  0x50   : > { %p3306_p9 = pnand %p3305_p5, %p3299_p2 }
  0x52   : > { %3309 = shalt.err (!%p3306_p9)
}
  0x53   : > { %s3310_s24 = scalar_lea.vmem %s3601_s11, 1024  ;;  %s3403_s23 = smov [#allocation2]  }
  0x54   : > { %p3311_p12 = scmp.ne.s32.totalorder %s3601_s11, %s3310_s24  ;;  %s3315_s26 = sshll.u32 %s3403_s23, 4  ;;  %s3316_s26 = int_to_ptr.vmem [resolvable:$false] %s3315_s26 }
  0x55   : > { %s3317_s20 = scalar_lea.vmem %s3316_s26, 2048  ;;  %p3318_p4 = scmp.lt.s32.totalorder %s3601_s11, %s3316_s26 }
  0x56   : > { %p3313_p1 = pnand %p3311_p12, %p3297_p0  ;;  %p3319_p13 = scmp.lt.s32.totalorder %s3317_s20, %s3310_s24 }
  0x58   : > { %p3314_p7 = pneg %p3313_p1  ;;  %p3320_p6 = por %p3319_p13, %p3318_p4 }
  0x5a   : > { %p3321_p10 = pnand %p3320_p6, %p3314_p7 }
  0x5c   : > { %3324 = shalt.err (!%p3321_p10)
}
  0x5d   : > { %s4339_s27 = smov 4   ;;  %s4340_s13 = smov 64  }
  0x5e   : > { %2967 = dma.hbm_to_vmem [thread:$0]  (!%p3603_p11), %s3599_s28, 1024, %s3601_s11, %s3607_s25, %s4340_s13, %s4340_s13, %s4339_s27  }
  0x5f   : > { %367 = sbr.rel (%p3503_p8) target bundleno = 1416 (0x588), region = 60 }
  0x66   : > { %s3641_s29 = sand.u32 1, %s3387_s14   ;;  %p4341_p4 = scmp.ne.s32.totalorder %s4331_s19, 0 }
  0x67   : > { %s2586_s24 = sshll.u32 %s3641_s29, 6  ;;  %s370_s23 = scalar_lea.sflag [#allocation3], %s3641_s29 }
  0x68   : > { %s3645_s26 = scalar_lea.vmem [#allocation2], %s2586_s24 }
  0x69   : > { %3370 = dma.done.wait (%p4341_p4), %s370_s23, 1024  }
  0x6a   : > { %3372 = vsyncadd (%p4341_p4), %s370_s23, 4294966272  ;;  %p4342_p7 = scmp.eq.s32.totalorder %s3484_s17, 0 }
  0x6c   : > { %3374 = dma.done.wait (%p4342_p7), [#allocation6], 4352   ;;  %p4343_p8 = pmov %p4342_p7 }
  0x6d   : > { %v4326_v0 = vmov 0   ;;  %s2590_s21 = sshll.u32 %s3484_s17, 4  ;;  %v3021_v1 = vld [vmem:[#allocation5] sm:$0xff]   ;;  %v3022_v2 = vld [vmem:[#allocation5 + $0x8] sm:$0xff]   ;;  %v3023_v3 = vld [vmem:[#allocation5 + $0x10] sm:$0xff]   ;;  %vm863_vm0 = vcmask 80896  }
  0x6e   : > { %3376 = vsyncadd (%p4343_p8), [#allocation6], 4294962944  ;;  %3019 = vset.pattern.permute.xlu0 %v4326_v0  ;;  %3020 = vset.pattern.permute.xlu1 %v4326_v0  ;;  %p425_p11 = scmp.lt.s32.totalorder %s2590_s21, 31  ;;  %v3024_v4 = vld [vmem:[#allocation5 + $0x18] sm:$0xff]   ;;  %v3029_v5 = vld [vmem:[%s3645_s26] sm:$0xff]   ;;  %vm1175_vm1 = vcmask 1044480  }
  0x6f   : > { %2875 = vmatprep.subr.bf16.mxu0 %v3021_v1  ;;  %2891 = vmatprep.mubr.bf16.mxu0 %v3029_v5  ;;  %v3025_v6 = vld [vmem:[#allocation5 + $0x20] sm:$0xff]   ;;  %v3026_v7 = vld [vmem:[#allocation5 + $0x28] sm:$0xff]   ;;  %v3027_v12 = vld [vmem:[#allocation5 + $0x30] sm:$0xff]   ;;  %vm1642_vm2 = vcmask 1041408   ;;  %vm1617_vm3 = vcmask 818176   ;;  %s2589_s27 = sshll.u32 %s3641_s29, 7 }
  0x70   : > { %2876 = vmatpush3.bf16.msra.mxu0 %v3021_v1  ;;  %s4359_s21 = smov (!%p425_p11, %s2590_s21), 31  ;;  %v3028_v15 = vld [vmem:[#allocation5 + $0x38] sm:$0xff]   ;;  %v3030_v18 = vld [vmem:[%s3645_s26 + $0x8] sm:$0xff]   ;;  %v3031_v21 = vld [vmem:[%s3645_s26 + $0x10] sm:$0xff]   ;;  %s4224_s13 = scalar_lea.vmem [#allocation8], %s2589_s27 }
  0x71   : > { %2877 = vmatprep.subr.bf16.mxu0 %v3022_v2  ;;  %s2591_s19 = sshll.u32 %s4359_s21, 3  ;;  %v3032_v24 = vld [vmem:[%s3645_s26 + $0x18] sm:$0xff]   ;;  %v3033_v27 = vld [vmem:[%s3645_s26 + $0x20] sm:$0xff]   ;;  %v3034_v30 = vld [vmem:[%s3645_s26 + $0x28] sm:$0xff]   ;;  %s2712_s24 = sshll.u32 %s3484_s17, 11 }
  0x72   : > { %s3662_s11 = scalar_lea.vmem %s4309_s1, %s2591_s19  ;;  %v3035_v31 = vld [vmem:[%s3645_s26 + $0x30] sm:$0xff]   ;;  %v3036_v32 = vld [vmem:[%s3645_s26 + $0x38] sm:$0xff]   ;;  %v3691_v38 = vld [vmem:[%s4310_s2] ss:$0 sm:$0xff]  ;;  %s2473_s23 = sshll.u32 %s4224_s13, 4  ;;  %s4261_s23 = int_to_ptr.vmem [resolvable:$true] %s2473_s23 }
  0x73   : > { %v665_v8 = vld [vmem:[%s3662_s11] sm:$0xff]  ;;  %v667_v9 = vld [vmem:[%s3662_s11 + $0x10] sm:$0xff]  ;;  %v666_v10 = vld [vmem:[%s3662_s11 + $0x8] sm:$0xff]  ;;  %s4259_s19 = scalar_lea.hbm %s4318_s10, %s2712_s24  ;;  %s2460_s25 = scalar_lea.sflag [#allocation4], %s3641_s29 }
  0x74   : > { %2878 = vmatpush3.bf16.msra.mxu0 %v3022_v2  ;;  %689 = vperm.xlu0 %3019, %v665_v8   ;;  %v668_v11 = vld [vmem:[%s3662_s11 + $0x18] sm:$0xff]  ;;  %v669_v13 = vld [vmem:[%s3662_s11 + $0x20] sm:$0xff]  ;;  %v670_v14 = vld [vmem:[%s3662_s11 + $0x28] sm:$0xff]  ;;  %s3325_s17 = scalar_lea.vmem %s4261_s23, 2048  ;;  %p4349_p2 = scmp.ne.s32.totalorder %s4337_s22, 0 }
  0x75   : > { %2879 = vmatprep.subr.bf16.mxu0 %v3023_v3  ;;  %699 = vperm.xlu1 %3020, %v667_v9   ;;  %v671_v16 = vld [vmem:[%s3662_s11 + $0x30] sm:$0xff]  ;;  %v672_v17 = vld [vmem:[%s3662_s11 + $0x38] sm:$0xff]  ;;  %v673_v19 = vld [vmem:[%s3662_s11 + $0x40] sm:$0xff]  ;;  %p3326_p0 = scmp.ne.s32.totalorder %s4261_s23, %s3325_s17  ;;  %s3405_s28 = smov [#allocation8]  }
  0x76   : > { %v674_v20 = vld [vmem:[%s3662_s11 + $0x48] sm:$0xff]  ;;  %v675_v22 = vld [vmem:[%s3662_s11 + $0x50] sm:$0xff]  ;;  %v676_v23 = vld [vmem:[%s3662_s11 + $0x58] sm:$0xff] }
  0x77   : > { %v677_v25 = vld [vmem:[%s3662_s11 + $0x60] sm:$0xff]  ;;  %v678_v26 = vld [vmem:[%s3662_s11 + $0x68] sm:$0xff]  ;;  %v679_v28 = vld [vmem:[%s3662_s11 + $0x70] sm:$0xff]  ;;  %p3327_p3 = pnand %p3326_p0, %p4349_p2 }
  0x78   : > { %2880 = vmatpush3.bf16.msra.mxu0 %v3023_v3  ;;  %694 = vperm.xlu0 %3019, %v666_v10   ;;  %v680_v29 = vld [vmem:[%s3662_s11 + $0x78] sm:$0xff]  ;;  %v3696_v39 = vld [vmem:[%s4312_s4] ss:$0 sm:$0xff]  ;;  %s3329_s11 = sshll.u32 %s3405_s28, 4  ;;  %s3330_s11 = int_to_ptr.vmem [resolvable:$false] %s3329_s11 }
  0x79   : > { %2881 = vmatprep.subr.bf16.mxu0 %v3024_v4  ;;  %704 = vperm.xlu1 %3020, %v668_v11   ;;  %p3328_p5 = pneg %p3327_p3  ;;  %s3331_s12 = scalar_lea.vmem %s3330_s11, 4096 }
  0x7a   : > { %p3332_p9 = scmp.lt.s32.totalorder %s4261_s23, %s3330_s11  ;;  %p3333_p12 = scmp.lt.s32.totalorder %s3331_s12, %s3325_s17 }
  0x7c   : > { %2882 = vmatpush3.bf16.msra.mxu0 %v3024_v4  ;;  %709 = vperm.xlu0 %3019, %v669_v13   ;;  %p3334_p1 = por %p3333_p12, %p3332_p9 }
  0x7d   : > { %2883 = vmatprep.subr.bf16.mxu0 %v3025_v6  ;;  %714 = vperm.xlu1 %3020, %v670_v14  }
  0x7e   : > { %p3335_p13 = pnand %p3334_p1, %p3328_p5 }
  0x80   : > { %2884 = vmatpush3.bf16.msra.mxu0 %v3025_v6  ;;  %719 = vperm.xlu0 %3019, %v671_v16  }
  0x81   : > { %2885 = vmatprep.subr.bf16.mxu0 %v3026_v7  ;;  %724 = vperm.xlu1 %3020, %v672_v17  }
  0x84   : > { %2886 = vmatpush3.bf16.msra.mxu0 %v3026_v7  ;;  %729 = vperm.xlu0 %3019, %v673_v19  }
  0x85   : > { %2887 = vmatprep.subr.bf16.mxu0 %v3027_v12  ;;  %734 = vperm.xlu1 %3020, %v674_v20  }
  0x88   : > { %2888 = vmatpush3.bf16.msra.mxu0 %v3027_v12  ;;  %739 = vperm.xlu0 %3019, %v675_v22  }
  0x89   : > { %2889 = vmatprep.subr.bf16.mxu0 %v3028_v15  ;;  %744 = vperm.xlu1 %3020, %v676_v23  }
  0x8c   : > { %2890 = vmatpush3.bf16.msra.mxu0 %v3028_v15  ;;  %749 = vperm.xlu0 %3019, %v677_v25  }
  0x8d   : > { %754 = vperm.xlu1 %3020, %v678_v26  }
  0x8f   : > { %2892 = vmatmul.mubr.bf16.vlgmr.msra.gmra.mrb[0].mxu0 %v3030_v18 }
  0x90   : > { %2895 = vmatprep.mubr.bf16.mxu0 %v3031_v21  ;;  %759 = vperm.xlu0 %3019, %v679_v28  }
  0x91   : > { %764 = vperm.xlu1 %3020, %v680_v29  }
  0x97   : > { %2896 = vmatmul.mubr.bf16.gmra.mrb[4].mxu0 %v3032_v24 }
  0x98   : > { %2899 = vmatprep.mubr.bf16.mxu0 %v3033_v27 }
  0x9f   : > { %2900 = vmatmul.mubr.bf16.gmra.mrb[8].mxu0 %v3034_v30 }
  0xa0   : > { %2903 = vmatprep.mubr.bf16.mxu0 %v3035_v31 }
  0xa7   : > { %2904 = vmatmul.mubr.bf16.gmra.mrb[12].mxu0 %v3036_v32 }
  0xa8   : > { %1687 = vmatprep.mubr.bf16.mxu0 %v4326_v0 }
  0xf3   : > { %v690_v33 = vpop.permute.xlu0 %689 }
  0xf4   : > { %v700_v34 = vpop.permute.xlu1 %699  ;;  %v767_v43 = vsub.f32 %v3691_v38, %v690_v33 }
  0xf5   : > { %v769_v48 = vsub.f32 %v3691_v38, %v700_v34 }
  0xf6   : > { %v783_v53 = vmul.f32 %v767_v43, %v767_v43 }
  0xf7   : > { %v695_v35 = vpop.permute.xlu0 %694  ;;  %v785_v57 = vmul.f32 %v769_v48, %v769_v48 }
  0xf8   : > { %v705_v36 = vpop.permute.xlu1 %704  ;;  %v768_v49 = vsub.f32 %v3691_v38, %v695_v35  ;;  %v799_v1 = vsub.f32 0.0, %v783_v53 }
  0xf9   : > { %v770_v54 = vsub.f32 %v3691_v38, %v705_v36  ;;  %v801_v9 = vsub.f32 0.0, %v785_v57 }
  0xfa   : > { %v784_v58 = vmul.f32 %v768_v49, %v768_v49  ;;  %v815_v16 = vmul.f32 5.5555553, %v799_v1 }
  0xfb   : > { %v710_v37 = vpop.permute.xlu0 %709  ;;  %v786_v2 = vmul.f32 %v770_v54, %v770_v54  ;;  %v817_v24 = vmul.f32 5.5555553, %v801_v9 }
  0xfc   : > { %v715_v41 = vpop.permute.xlu1 %714  ;;  %v771_v3 = vsub.f32 %v3691_v38, %v710_v37  ;;  %v800_v10 = vsub.f32 0.0, %v784_v58  ;;  %v831_v30 = vmul.f32 1.442695, %v815_v16 }
  0xfd   : > { %v772_v7 = vsub.f32 %v3691_v38, %v715_v41  ;;  %v802_v17 = vsub.f32 0.0, %v786_v2 }
  0xfe   : > { %v787_v18 = vmul.f32 %v771_v3, %v771_v3  ;;  %v816_v25 = vmul.f32 5.5555553, %v800_v10  ;;  %3111 = vpow2.f32 %v831_v30 }
  0xff   : > { %v720_v46 = vpop.permute.xlu0 %719  ;;  %v788_v22 = vmul.f32 %v772_v7, %v772_v7  ;;  %v818_v32 = vmul.f32 5.5555553, %v802_v17 }
 0x100   : > { %v725_v56 = vpop.permute.xlu1 %724  ;;  %v773_v11 = vsub.f32 %v3691_v38, %v720_v46  ;;  %v803_v33 = vsub.f32 0.0, %v787_v18  ;;  %v833_v43 = vmul.f32 1.442695, %v816_v25 }
 0x101   : > { %v774_v27 = vsub.f32 %v3691_v38, %v725_v56 }
 0x102   : > { %v789_v26 = vmul.f32 %v773_v11, %v773_v11  ;;  %v819_v56 = vmul.f32 5.5555553, %v803_v33 }
 0x103   : > { %v730_v62 = vpop.permute.xlu0 %729 }
 0x104   : > { %v735_v15 = vpop.permute.xlu1 %734  ;;  %v775_v29 = vsub.f32 %v3691_v38, %v730_v62  ;;  %v805_v46 = vsub.f32 0.0, %v789_v26  ;;  %v839_v9 = vmul.f32 1.442695, %v819_v56 }
 0x105   : > { %v776_v53 = vsub.f32 %v3691_v38, %v735_v15 }
 0x107   : > { %v740_v23 = vpop.permute.xlu0 %739 }
 0x108   : > { %v745_v41 = vpop.permute.xlu1 %744  ;;  %v777_v57 = vsub.f32 %v3691_v38, %v740_v23 }
 0x109   : > { %v778_v7 = vsub.f32 %v3691_v38, %v745_v41  ;;  %v3791_v41 = vpop.eup %3111 }
 0x10a   : > { %v864_v56 = vsel %vm863_vm0, %v3791_v41, 0.0 }
 0x10b   : > { %v750_v54 = vpop.permute.xlu0 %749 }
 0x162   : > { %v2893_v40 = vpop.f32.mrb[0].mxu0 }
 0x163   : > { %v601_v42 = vpop.f32.mrb[1].mxu0  ;;  %v3705_v50 = vadd.f32 %v2893_v40, %v3696_v39  ;;  %v804_v40 = vsub.f32 0.0, %v788_v22 }
 0x164   : > { %v3700_v44 = vadd.f32 %v3696_v39, %v601_v42  ;;  %v2894_v45 = vpop.f32.mrb[2].mxu0  ;;  %v835_v42 = vmul.f32 1.442695, %v817_v24 }
 0x165   : > { %v604_v47 = vpop.f32.mrb[3].mxu0  ;;  %v3716_v59 = vadd.f32 %v2894_v45, %v3696_v39  ;;  %v966_v61 = vsel %vm863_vm0, %v3705_v50, -inf  ;;  %v820_v62 = vmul.f32 5.5555553, %v804_v40 }
 0x166   : > { %v3708_v51 = vadd.f32 %v3696_v39, %v604_v47  ;;  %v960_v52 = vsel %vm863_vm0, %v3700_v44, -inf  ;;  %v790_v47 = vmul.f32 %v774_v27, %v774_v27  ;;  %3113 = vpow2.f32 %v835_v42 }
 0x167   : > { %961 = vmax.xlane.f32.xlu0 %v960_v52  ;;  %v969_v14 = vsel %vm863_vm0, %v3716_v59, -inf  ;;  %v791_v52 = vmul.f32 %v775_v29, %v775_v29  ;;  %3115 = vpow2.f32 %v833_v43  ;;  %v841_v15 = vmul.f32 1.442695, %v820_v62 }
 0x168   : > { %v963_v55 = vsel %vm863_vm0, %v3708_v51, -inf  ;;  %v806_v1 = vsub.f32 0.0, %v790_v47 }
 0x169   : > { %964 = vmax.xlane.f32.xlu1 %v963_v55  ;;  %v837_v55 = vmul.f32 1.442695, %v818_v32  ;;  %v807_v3 = vsub.f32 0.0, %v791_v52 }
 0x16a   : > { %v2897_v60 = vpop.f32.mrb[4].mxu0  ;;  %v822_v24 = vmul.f32 5.5555553, %v806_v1 }
 0x16b   : > { %v617_v63 = vpop.f32.mrb[5].mxu0  ;;  %967 = vmax.xlane.f32.xlu0 %v966_v61  ;;  %v3722_v4 = vadd.f32 %v2897_v60, %v3696_v39  ;;  %3117 = vpow2.f32 %v837_v55  ;;  %v823_v26 = vmul.f32 5.5555553, %v807_v3 }
 0x16c   : > { %v3725_v5 = vadd.f32 %v3696_v39, %v617_v63  ;;  %v2898_v6 = vpop.f32.mrb[6].mxu0  ;;  %v821_v63 = vmul.f32 5.5555553, %v805_v46  ;;  %3119 = vpow2.f32 %v839_v9  ;;  %v845_v42 = vmul.f32 1.442695, %v822_v24 }
 0x16d   : > { %v620_v8 = vpop.f32.mrb[7].mxu0  ;;  %v3737_v19 = vadd.f32 %v2898_v6, %v3696_v39  ;;  %v978_v20 = vsel %vm863_vm0, %v3722_v4, -inf  ;;  %v792_v6 = vmul.f32 %v776_v53, %v776_v53  ;;  %3121 = vpow2.f32 %v841_v15 }
 0x16e   : > { %v3730_v12 = vadd.f32 %v3696_v39, %v620_v8  ;;  %v972_v13 = vsel %vm863_vm0, %v3725_v5, -inf  ;;  %v755_v8 = vpop.permute.xlu1 %754  ;;  %v847_v43 = vmul.f32 1.442695, %v823_v26 }
 0x16f   : > { %973 = vmax.xlane.f32.xlu1 %v972_v13  ;;  %970 = vmax.xlane.f32.xlu0 %v969_v14  ;;  %v981_v37 = vsel %vm863_vm0, %v3737_v19, -inf  ;;  %v793_v13 = vmul.f32 %v777_v57, %v777_v57  ;;  %v779_v14 = vsub.f32 %v3691_v38, %v750_v54  ;;  %v808_v27 = vsub.f32 0.0, %v792_v6 }
 0x170   : > { %v975_v21 = vsel %vm863_vm0, %v3730_v12, -inf  ;;  %v780_v29 = vsub.f32 %v3691_v38, %v755_v8 }
 0x171   : > { %v809_v30 = vsub.f32 0.0, %v793_v13 }
 0x172   : > { %v2901_v28 = vpop.f32.mrb[8].mxu0  ;;  %v765_v40 = vpop.permute.xlu1 %764  ;;  %v796_v47 = vmul.f32 %v780_v29, %v780_v29 }
 0x173   : > { %v633_v31 = vpop.f32.mrb[9].mxu0  ;;  %979 = vmax.xlane.f32.xlu1 %v978_v20  ;;  %976 = vmax.xlane.f32.xlu0 %v975_v21  ;;  %v3746_v34 = vadd.f32 %v2901_v28, %v3696_v39  ;;  %v760_v20 = vpop.permute.xlu0 %759  ;;  %v843_v21 = vmul.f32 1.442695, %v821_v63  ;;  %v794_v28 = vmul.f32 %v778_v7, %v778_v7  ;;  %v782_v54 = vsub.f32 %v3691_v38, %v765_v40 }
 0x174   : > { %v3749_v35 = vadd.f32 %v3696_v39, %v633_v31  ;;  %v2902_v36 = vpop.f32.mrb[10].mxu0  ;;  %v795_v31 = vmul.f32 %v779_v14, %v779_v14  ;;  %v781_v32 = vsub.f32 %v3691_v38, %v760_v20  ;;  %v812_v63 = vsub.f32 0.0, %v796_v47 }
 0x175   : > { %v636_v45 = vpop.f32.mrb[11].mxu0  ;;  %v3761_v58 = vadd.f32 %v2902_v36, %v3696_v39  ;;  %v990_v60 = vsel %vm863_vm0, %v3746_v34, -inf  ;;  %3123 = vpow2.f32 %v843_v21  ;;  %v810_v46 = vsub.f32 0.0, %v794_v28 }
 0x176   : > { %v3754_v48 = vadd.f32 %v3696_v39, %v636_v45  ;;  %v984_v49 = vsel %vm863_vm0, %v3749_v35, -inf  ;;  %v824_v45 = vmul.f32 5.5555553, %v808_v27  ;;  %v811_v52 = vsub.f32 0.0, %v795_v31 }
 0x177   : > { %985 = vmax.xlane.f32.xlu1 %v984_v49  ;;  %982 = vmax.xlane.f32.xlu0 %v981_v37  ;;  %v993_v18 = vsel %vm863_vm0, %v3761_v58, -inf  ;;  %v3793_v49 = vpop.eup %3113  ;;  %v797_v53 = vmul.f32 %v781_v32, %v781_v32  ;;  %3125 = vpow2.f32 %v845_v42  ;;  %v826_v62 = vmul.f32 5.5555553, %v810_v46 }
 0x178   : > { %v987_v61 = vsel %vm863_vm0, %v3754_v48, -inf  ;;  %v3796_v55 = vpop.eup %3115  ;;  %3127 = vpow2.f32 %v847_v43  ;;  %v798_v3 = vmul.f32 %v782_v54, %v782_v54  ;;  %v870_v6 = vsel %vm863_vm0, %v3793_v49, 0.0 }
 0x179   : > { %v813_v38 = vsub.f32 0.0, %v797_v53  ;;  %v867_v7 = vsel %vm863_vm0, %v3796_v55, 0.0  ;;  %v828_v13 = vmul.f32 5.5555553, %v812_v63  ;;  %v3038_v63 = vld [vmem:[%s4314_s6] sm:$0x1f]  }
 0x17a   : > { %v2905_v2 = vpop.f32.mrb[12].mxu0 }
 0x17b   : > { %v3769_v10 = vadd.f32 %v2905_v2, %v3696_v39  ;;  %991 = vmax.xlane.f32.xlu1 %v990_v60  ;;  %988 = vmax.xlane.f32.xlu0 %v987_v61  ;;  %v649_v11 = vpop.f32.mrb[13].mxu0  ;;  %v3802_v60 = vpop.eup %3117  ;;  %v849_v61 = vmul.f32 1.442695, %v824_v45  ;;  %v827_v2 = vmul.f32 5.5555553, %v811_v52 }
 0x17c   : > { %v3773_v16 = vadd.f32 %v3696_v39, %v649_v11  ;;  %v2906_v17 = vpop.f32.mrb[14].mxu0  ;;  %v3808_v8 = vpop.eup %3119  ;;  %v853_v11 = vmul.f32 1.442695, %v826_v62  ;;  %v873_v21 = vsel %vm863_vm0, %v3802_v60, 0.0 }
 0x17d   : > { %4344 = vst [vmem:[#allocation14_spill] sm:$0xff] %v3769_v10  ;;  %v3778_v22 = vadd.f32 %v2906_v17, %v3696_v39  ;;  %v1002_v23 = vsel %vm863_vm0, %v3769_v10, -inf  ;;  %v652_v25 = vpop.f32.mrb[15].mxu0  ;;  %v3810_v9 = vpop.eup %3121  ;;  %3129 = vpow2.f32 %v849_v61  ;;  %v855_v15 = vmul.f32 1.442695, %v827_v2 }
 0x17e   : > { %v3785_v33 = vadd.f32 %v3696_v39, %v652_v25  ;;  %v996_v36 = vsel %vm863_vm0, %v3773_v16, -inf  ;;  %v825_v39 = vmul.f32 5.5555553, %v809_v30  ;;  %v829_v17 = vmul.f32 5.5555553, %v813_v38 }
 0x17f   : > { %4345 = vst [vmem:[#allocation15_spill] sm:$0xff] %v3778_v22  ;;  %1003 = vmax.xlane.f32.xlu1 %v1002_v23  ;;  %994 = vmax.xlane.f32.xlu0 %v993_v18  ;;  %v1005_v37 = vsel %vm863_vm0, %v3778_v22, -inf  ;;  %v3812_v14 = vpop.eup %3123  ;;  %v814_v18 = vsub.f32 0.0, %v798_v3  ;;  %v876_v20 = vsel %vm863_vm0, %v3808_v8, 0.0  ;;  %v857_v23 = vmul.f32 1.442695, %v828_v13 }
 0x180   : > { %v999_v57 = vsel %vm863_vm0, %v3785_v33, -inf  ;;  %v851_v1 = vmul.f32 1.442695, %v825_v39  ;;  %v859_v25 = vmul.f32 1.442695, %v829_v17  ;;  %v882_v28 = vsel %vm863_vm0, %v3812_v14, 0.0 }
 0x181   : > { %v3818_v24 = vpop.eup %3125  ;;  %v830_v26 = vmul.f32 5.5555553, %v814_v18  ;;  %v879_v29 = vsel %vm863_vm0, %v3810_v9, 0.0  ;;  %v3037_v61 = vld [vmem:[%s4313_s5] sm:$0x1f]  }
 0x182   : > { %3131 = vpow2.f32 %v851_v1  ;;  %v3820_v27 = vpop.eup %3127  ;;  %2943 = vmatprep.subr.msk.bf16.mxu1 %vm1175_vm1, %v3037_v61  ;;  %v1177_v62 = vsel %vm1175_vm1, %v3037_v61, 0  ;;  %v3864_v1 = vsel %vm1175_vm1, %v3038_v63, 0 }
 0x183   : > { %997 = vmax.xlane.f32.xlu1 %v996_v36  ;;  %1006 = vmax.xlane.f32.xlu0 %v1005_v37  ;;  %3133 = vpow2.f32 %v853_v11  ;;  %v861_v30 = vmul.f32 1.442695, %v830_v26  ;;  %v888_v32 = vsel %vm863_vm0, %v3820_v27, 0.0  ;;  %v885_v36 = vsel %vm863_vm0, %v3818_v24, 0.0 }
 0x184   : > { %3135 = vpow2.f32 %v855_v15  ;;  %2908 = vmatpush3.bf16.msra.mxu1 %v1177_v62 }
 0x185   : > { %3137 = vpow2.f32 %v857_v23  ;;  %2944 = vmatprep.subr.msk.bf16.mxu1 %vm1175_vm1, %v3038_v63 }
 0x186   : > { %3139 = vpow2.f32 %v859_v25 }
 0x187   : > { %865 = vadd.xlane.f32.xlu1 %v864_v56  ;;  %1000 = vmax.xlane.f32.xlu0 %v999_v57  ;;  %v3826_v31 = vpop.eup %3129  ;;  %3141 = vpow2.f32 %v861_v30 }
 0x188   : > { %v891_v43 = vsel %vm863_vm0, %v3826_v31, 0.0 }
 0x18b   : > { %871 = vadd.xlane.f32.xlu1 %v870_v6  ;;  %868 = vadd.xlane.f32.xlu0 %v867_v7 }
 0x18c   : > { %v3832_v37 = vpop.eup %3131 }
 0x18d   : > { %v3834_v40 = vpop.eup %3133  ;;  %v894_v42 = vsel %vm863_vm0, %v3832_v37, 0.0 }
 0x18e   : > { %v3840_v45 = vpop.eup %3135  ;;  %v897_v39 = vsel %vm863_vm0, %v3834_v40, 0.0 }
 0x18f   : > { %877 = vadd.xlane.f32.xlu1 %v876_v20  ;;  %874 = vadd.xlane.f32.xlu0 %v873_v21  ;;  %v3842_v46 = vpop.eup %3137  ;;  %v900_v47 = vsel %vm863_vm0, %v3840_v45, 0.0 }
 0x190   : > { %v3848_v52 = vpop.eup %3139  ;;  %v903_v54 = vsel %vm863_vm0, %v3842_v46, 0.0 }
 0x191   : > { %v906_v53 = vsel %vm863_vm0, %v3848_v52, 0.0  ;;  %v3854_v56 = vpop.eup %3141 }
 0x192   : > { %v909_v57 = vsel %vm863_vm0, %v3854_v56, 0.0 }
 0x193   : > { %883 = vadd.xlane.f32.xlu1 %v882_v28  ;;  %880 = vadd.xlane.f32.xlu0 %v879_v29 }
 0x197   : > { %889 = vadd.xlane.f32.xlu1 %v888_v32  ;;  %886 = vadd.xlane.f32.xlu0 %v885_v36 }
 0x19b   : > { %895 = vadd.xlane.f32.xlu1 %v894_v42  ;;  %892 = vadd.xlane.f32.xlu0 %v891_v43 }
 0x19f   : > { %901 = vadd.xlane.f32.xlu1 %v900_v47  ;;  %898 = vadd.xlane.f32.xlu0 %v897_v39 }
 0x1a3   : > { %907 = vadd.xlane.f32.xlu1 %v906_v53  ;;  %904 = vadd.xlane.f32.xlu0 %v903_v54 }
 0x1a7   : > { %910 = vadd.xlane.f32.xlu0 %v909_v57 }
 0x1f4   : > { %v962_v2 = vpop.xlane.xlu0 %961 }
 0x1f5   : > { %v1008_v38 = vsub.f32 %v3700_v44, %v962_v2 }
 0x1f6   : > { %v965_v3 = vpop.xlane.xlu1 %964 }
 0x1f7   : > { %v1024_v6 = vmul.f32 1.442695, %v1008_v38  ;;  %v1009_v7 = vsub.f32 %v3708_v51, %v965_v3 }
 0x1f8   : > { %v968_v11 = vpop.xlane.xlu0 %967 }
 0x1f9   : > { %3143 = vpow2.f32 %v1024_v6  ;;  %v1026_v13 = vmul.f32 1.442695, %v1009_v7  ;;  %v1010_v15 = vsub.f32 %v3705_v50, %v968_v11 }
 0x1fb   : > { %3145 = vpow2.f32 %v1026_v13  ;;  %v1028_v17 = vmul.f32 1.442695, %v1010_v15 }
 0x1fc   : > { %v974_v18 = vpop.xlane.xlu1 %973  ;;  %v971_v20 = vpop.xlane.xlu0 %970 }
 0x1fd   : > { %3147 = vpow2.f32 %v1028_v17  ;;  %v1012_v21 = vsub.f32 %v3725_v5, %v974_v18  ;;  %v1011_v23 = vsub.f32 %v3716_v59, %v971_v20 }
 0x1ff   : > { %v1032_v25 = vmul.f32 1.442695, %v1012_v21  ;;  %v1030_v26 = vmul.f32 1.442695, %v1011_v23 }
 0x200   : > { %v980_v28 = vpop.xlane.xlu1 %979  ;;  %v977_v29 = vpop.xlane.xlu0 %976 }
 0x201   : > { %3149 = vpow2.f32 %v1032_v25  ;;  %v1014_v30 = vsub.f32 %v3722_v4, %v980_v28  ;;  %v1013_v32 = vsub.f32 %v3730_v12, %v977_v29 }
 0x202   : > { %3151 = vpow2.f32 %v1030_v26 }
 0x203   : > { %v3873_v36 = vpop.eup %3143  ;;  %v1036_v42 = vmul.f32 1.442695, %v1014_v30  ;;  %v1034_v43 = vmul.f32 1.442695, %v1013_v32 }
 0x204   : > { %v986_v47 = vpop.xlane.xlu1 %985  ;;  %v983_v39 = vpop.xlane.xlu0 %982  ;;  %v1056_v53 = vsel %vm863_vm0, %v3873_v36, 0.0 }
 0x205   : > { %v3877_v54 = vpop.eup %3145  ;;  %3153 = vpow2.f32 %v1036_v42  ;;  %v1016_v57 = vsub.f32 %v3749_v35, %v986_v47  ;;  %v1015_v61 = vsub.f32 %v3737_v19, %v983_v39  ;;  %1057 = vadd.xlane.f32.xlu1 %v1056_v53 }
 0x206   : > { %3155 = vpow2.f32 %v1034_v43  ;;  %v1059_v62 = vsel %vm863_vm0, %v3877_v54, 0.0 }
 0x207   : > { %v3883_v63 = vpop.eup %3147  ;;  %v1040_v2 = vmul.f32 1.442695, %v1016_v57  ;;  %v1038_v38 = vmul.f32 1.442695, %v1015_v61  ;;  %1060 = vadd.xlane.f32.xlu0 %v1059_v62 }
 0x208   : > { %v992_v3 = vpop.xlane.xlu1 %991  ;;  %v989_v6 = vpop.xlane.xlu0 %988  ;;  %v1062_v7 = vsel %vm863_vm0, %v3883_v63, 0.0 }
 0x209   : > { %3157 = vpow2.f32 %v1040_v2  ;;  %v1018_v11 = vsub.f32 %v3746_v34, %v992_v3  ;;  %v1017_v13 = vsub.f32 %v3754_v48, %v989_v6  ;;  %1063 = vadd.xlane.f32.xlu1 %v1062_v7 }
 0x20a   : > { %3159 = vpow2.f32 %v1038_v38 }
 0x20b   : > { %v3889_v15 = vpop.eup %3149  ;;  %v1044_v17 = vmul.f32 1.442695, %v1018_v11  ;;  %v1042_v18 = vmul.f32 1.442695, %v1017_v13 }
 0x20c   : > { %v3891_v20 = vpop.eup %3151  ;;  %v1004_v21 = vpop.xlane.xlu1 %1003  ;;  %v1068_v25 = vsel %vm863_vm0, %v3889_v15, 0.0 }
 0x20d   : > { %v995_v23 = vpop.xlane.xlu0 %994  ;;  %3161 = vpow2.f32 %v1044_v17  ;;  %1069 = vadd.xlane.f32.xlu1 %v1068_v25  ;;  %v1065_v28 = vsel %vm863_vm0, %v3891_v20, 0.0  ;;  %v1022_v30 = vsub.f32 %v3769_v10, %v1004_v21 }
 0x20e   : > { %v1019_v26 = vsub.f32 %v3761_v58, %v995_v23  ;;  %3163 = vpow2.f32 %v1042_v18  ;;  %1066 = vadd.xlane.f32.xlu0 %v1065_v28 }
 0x20f   : > { %v3898_v29 = vpop.eup %3153  ;;  %v1052_v62 = vmul.f32 1.442695, %v1022_v30 }
 0x210   : > { %v1046_v32 = vmul.f32 1.442695, %v1019_v26  ;;  %v3901_v42 = vpop.eup %3155  ;;  %v998_v43 = vpop.xlane.xlu1 %997  ;;  %v1074_v39 = vsel %vm863_vm0, %v3898_v29, 0.0 }
 0x211   : > { %v1007_v47 = vpop.xlane.xlu0 %1006  ;;  %v1020_v53 = vsub.f32 %v3773_v16, %v998_v43  ;;  %1075 = vadd.xlane.f32.xlu1 %v1074_v39  ;;  %v1071_v57 = vsel %vm863_vm0, %v3901_v42, 0.0 }
 0x212   : > { %3165 = vpow2.f32 %v1046_v32  ;;  %1072 = vadd.xlane.f32.xlu0 %v1071_v57  ;;  %v1023_v38 = vsub.f32 %v3778_v22, %v1007_v47 }
 0x213   : > { %v3908_v61 = vpop.eup %3157  ;;  %v1048_v2 = vmul.f32 1.442695, %v1020_v53 }
 0x214   : > { %v3911_v3 = vpop.eup %3159  ;;  %v866_v6 = vpop.xlane.xlu1 %865  ;;  %v1080_v11 = vsel %vm863_vm0, %v3908_v61, 0.0  ;;  %v1054_v23 = vmul.f32 1.442695, %v1023_v38 }
 0x215   : > { %v1001_v7 = vpop.xlane.xlu0 %1000  ;;  %3167 = vpow2.f32 %v1048_v2  ;;  %1081 = vadd.xlane.f32.xlu1 %v1080_v11  ;;  %v1077_v17 = vsel %vm863_vm0, %v3911_v3, 0.0  ;;  %v912_v18 = vmax.f32 %v866_v6, 1e-12 }
 0x216   : > { %v1021_v13 = vsub.f32 %v3785_v33, %v1001_v7  ;;  %1078 = vadd.xlane.f32.xlu0 %v1077_v17  ;;  %3169 = vpow2.f32 %v1052_v62 }
 0x217   : > { %v3918_v21 = vpop.eup %3161 }
 0x218   : > { %v1050_v25 = vmul.f32 1.442695, %v1021_v13  ;;  %v3920_v26 = vpop.eup %3163  ;;  %v872_v28 = vpop.xlane.xlu1 %871  ;;  %v1086_v32 = vsel %vm863_vm0, %v3918_v21, 0.0 }
 0x219   : > { %v869_v30 = vpop.xlane.xlu0 %868  ;;  %1087 = vadd.xlane.f32.xlu1 %v1086_v32  ;;  %v1083_v47 = vsel %vm863_vm0, %v3920_v26, 0.0  ;;  %v914_v39 = vmax.f32 %v872_v28, 1e-12 }
 0x21a   : > { %3171 = vpow2.f32 %v1050_v25  ;;  %v913_v43 = vmax.f32 %v869_v30, 1e-12  ;;  %1084 = vadd.xlane.f32.xlu0 %v1083_v47 }
 0x21b   : > { %3173 = vrcp.f32 %v912_v18 }
 0x21c   : > { %3175 = vpow2.f32 %v1054_v23  ;;  %v3926_v53 = vpop.eup %3165  ;;  %v878_v57 = vpop.xlane.xlu1 %877 }
 0x21d   : > { %3177 = vrcp.f32 %v913_v43  ;;  %v875_v62 = vpop.xlane.xlu0 %874  ;;  %v1089_v38 = vsel %vm863_vm0, %v3926_v53, 0.0  ;;  %v916_v6 = vmax.f32 %v878_v57, 1e-12 }
 0x21e   : > { %v915_v2 = vmax.f32 %v875_v62, 1e-12  ;;  %3179 = vrcp.f32 %v914_v39  ;;  %1090 = vadd.xlane.f32.xlu0 %v1089_v38 }
 0x21f   : > { %v3930_v7 = vpop.eup %3167 }
 0x220   : > { %3181 = vrcp.f32 %v915_v2  ;;  %v884_v11 = vpop.xlane.xlu1 %883  ;;  %v1092_v17 = vsel %vm863_vm0, %v3930_v7, 0.0  ;;  %v3934_v18 = vpop.eup %3169 }
 0x221   : > { %v881_v13 = vpop.xlane.xlu0 %880  ;;  %1093 = vadd.xlane.f32.xlu1 %v1092_v17  ;;  %3183 = vrcp.f32 %v916_v6  ;;  %v918_v25 = vmax.f32 %v884_v11, 1e-12  ;;  %v1098_v47 = vsel %vm863_vm0, %v3934_v18, 0.0 }
 0x222   : > { %v917_v23 = vmax.f32 %v881_v13, 1e-12 }
 0x224   : > { %v3936_v28 = vpop.eup %3171  ;;  %3185 = vrcp.f32 %v917_v23  ;;  %v890_v32 = vpop.xlane.xlu1 %889 }
 0x225   : > { %v3174_v30 = vpop.eup %3173  ;;  %v887_v43 = vpop.xlane.xlu0 %886  ;;  %v1095_v39 = vsel %vm863_vm0, %v3936_v28, 0.0  ;;  %1099 = vadd.xlane.f32.xlu1 %v1098_v47  ;;  %3187 = vrcp.f32 %v918_v25  ;;  %v920_v38 = vmax.f32 %v890_v32, 1e-12 }
 0x226   : > { %v3942_v57 = vpop.eup %3175  ;;  %v919_v62 = vmax.f32 %v887_v43, 1e-12  ;;  %1096 = vadd.xlane.f32.xlu0 %v1095_v39  ;;  %v944_v6 = vmul.f32 %v3174_v30, %v3791_v41 }
 0x227   : > { %v3178_v2 = vpop.eup %3177  ;;  %v1101_v0 = vsel %vm863_vm0, %v3942_v57, 0.0 }
 0x228   : > { %v945_v11 = vmul.f32 %v3178_v2, %v3796_v55  ;;  %v3180_v13 = vpop.eup %3179  ;;  %3189 = vrcp.f32 %v919_v62  ;;  %v896_v17 = vpop.xlane.xlu1 %895 }
 0x229   : > { %v893_v23 = vpop.xlane.xlu0 %892  ;;  %3191 = vrcp.f32 %v920_v38  ;;  %v922_v47 = vmax.f32 %v896_v17, 1e-12  ;;  %v946_v25 = vmul.f32 %v3180_v13, %v3793_v49 }
 0x22a   : > { %v921_v22 = vmax.f32 %v893_v23, 1e-12  ;;  %1102 = vadd.xlane.f32.xlu0 %v1101_v0  ;;  %v1136_v10 = vpack.c.bf16 %v945_v11, %v944_v6  ;;  %v3182_v43 = vpop.eup %3181 }
 0x22b   : > { %v947_v41 = vmul.f32 %v3182_v43, %v3802_v60  ;;  %v3184_v55 = vpop.eup %3183 }
 0x22c   : > { %2909 = vmatprep.mubr.msk.bf16.mxu1 %vm863_vm0, %v1136_v10  ;;  %3193 = vrcp.f32 %v921_v22  ;;  %v902_v30 = vpop.xlane.xlu1 %901  ;;  %v948_v0 = vmul.f32 %v3184_v55, %v3808_v8 }
 0x22d   : > { %v899_v32 = vpop.xlane.xlu0 %898  ;;  %v1137_v62 = vpack.c.bf16 %v947_v41, %v946_v25  ;;  %3195 = vrcp.f32 %v922_v47  ;;  %v924_v23 = vmax.f32 %v902_v30, 1e-12 }
 0x22e   : > { %v923_v39 = vmax.f32 %v899_v32, 1e-12  ;;  %v3186_v2 = vpop.eup %3185 }
 0x22f   : > { %2910 = vmatmul.mubr.msk.bf16.vlgmr.msra.gmra.mrb[0].mxu1 %vm863_vm0, %v1137_v62  ;;  %v949_v38 = vmul.f32 %v3186_v2, %v3810_v9  ;;  %v3188_v10 = vpop.eup %3187 }
 0x230   : > { %3197 = vrcp.f32 %v923_v39  ;;  %v908_v49 = vpop.xlane.xlu1 %907  ;;  %2926 = vmatpush3.bf16.msra.mxu1 %v3864_v1  ;;  %v950_v17 = vmul.f32 %v3188_v10, %v3812_v14 }
 0x231   : > { %v905_v6 = vpop.xlane.xlu0 %904  ;;  %v926_v22 = vmax.f32 %v908_v49, 1e-12  ;;  %v1138_v11 = vpack.c.bf16 %v949_v38, %v948_v0  ;;  %3199 = vrcp.f32 %v924_v23 }
 0x232   : > { %v925_v60 = vmax.f32 %v905_v6, 1e-12  ;;  %v3190_v13 = vpop.eup %3189 }
 0x233   : > { %2913 = vmatprep.mubr.msk.bf16.mxu1 %vm863_vm0, %v1138_v11  ;;  %v951_v43 = vmul.f32 %v3190_v13, %v3818_v24  ;;  %v3192_v8 = vpop.eup %3191  ;;  %v3039_v13 = vld [vmem:[#allocation7] ss:$16 sps:$4 sm:$0xff]  }
 0x234   : > { %3201 = vrcp.f32 %v925_v60  ;;  %v952_v1 = vmul.f32 %v3192_v8, %v3820_v27 }
 0x235   : > { %v911_v9 = vpop.xlane.xlu0 %910  ;;  %3203 = vrcp.f32 %v926_v22  ;;  %v1139_v25 = vpack.c.bf16 %v951_v43, %v950_v17  ;;  %v3041_v17 = vld [vmem:[#allocation7 + $0x4] ss:$16 sps:$4 sm:$0xff]  }
 0x236   : > { %v927_v47 = vmax.f32 %v911_v9, 1e-12  ;;  %v3194_v41 = vpop.eup %3193  ;;  %v3047_v43 = vld [vmem:[#allocation7 + $0x24] ss:$16 sps:$4 sm:$0xff]   ;;  %1655 = vmatprep.subr.bf16.mxu0 %v3041_v17 }
 0x237   : > { %2914 = vmatmul.mubr.msk.bf16.gmra.mrb[4].mxu1 %vm863_vm0, %v1139_v25  ;;  %v953_v55 = vmul.f32 %v3194_v41, %v3826_v31  ;;  %v3196_v30 = vpop.eup %3195  ;;  %1656 = vmatpush1.bf16.msra.mxu0 %v3039_v13  ;;  %v3045_v41 = vld [vmem:[#allocation7 + $0x20] ss:$16 sps:$4 sm:$0xff]  }
 0x238   : > { %3205 = vrcp.f32 %v927_v47  ;;  %v954_v14 = vmul.f32 %v3196_v30, %v3832_v37  ;;  %1657 = vmatprep.subr.bf16.mxu0 %v3047_v43  ;;  %v3069_v43 = vld [vmem:[#allocation7 + $0xa0] ss:$16 sps:$4 sm:$0xff]  }
 0x239   : > { %v1140_v32 = vpack.c.bf16 %v953_v55, %v952_v1  ;;  %v3053_v1 = vld [vmem:[#allocation7 + $0x44] ss:$16 sps:$4 sm:$0xff]  }
 0x23a   : > { %v3198_v39 = vpop.eup %3197 }
 0x23b   : > { %2917 = vmatprep.mubr.msk.bf16.mxu1 %vm863_vm0, %v1140_v32  ;;  %v955_v24 = vmul.f32 %v3198_v39, %v3834_v40  ;;  %v3200_v62 = vpop.eup %3199  ;;  %1658 = vmatpush1.bf16.msra.mxu0 %v3045_v41 }
 0x23c   : > { %v956_v38 = vmul.f32 %v3200_v62, %v3840_v45  ;;  %1659 = vmatprep.subr.bf16.mxu0 %v3053_v1 }
 0x23d   : > { %v1141_v2 = vpack.c.bf16 %v955_v24, %v954_v14  ;;  %v3051_v14 = vld [vmem:[#allocation7 + $0x40] ss:$16 sps:$4 sm:$0xff]   ;;  %v3059_v24 = vld [vmem:[#allocation7 + $0x64] ss:$16 sps:$4 sm:$0xff]  }
 0x23e   : > { %v3202_v23 = vpop.eup %3201 }
 0x23f   : > { %v3204_v0 = vpop.eup %3203  ;;  %2918 = vmatmul.mubr.msk.bf16.gmra.mrb[8].mxu1 %vm863_vm0, %v1141_v2  ;;  %v957_v27 = vmul.f32 %v3202_v23, %v3842_v46  ;;  %1660 = vmatpush1.bf16.msra.mxu0 %v3051_v14 }
 0x240   : > { %v958_v49 = vmul.f32 %v3204_v0, %v3848_v52  ;;  %1661 = vmatprep.subr.bf16.mxu0 %v3059_v24 }
 0x241   : > { %v1142_v10 = vpack.c.bf16 %v957_v27, %v956_v38  ;;  %v3042_v38 = vld [vmem:[#allocation7 + $0x8] ss:$16 sps:$4 sm:$0xff]   ;;  %v3057_v27 = vld [vmem:[#allocation7 + $0x60] ss:$16 sps:$4 sm:$0xff]  }
 0x242   : > { %v3206_v31 = vpop.eup %3205 }
 0x243   : > { %v959_v6 = vmul.f32 %v3206_v31, %v3854_v56  ;;  %2921 = vmatprep.mubr.msk.bf16.mxu1 %vm863_vm0, %v1142_v10  ;;  %v3044_v56 = vld [vmem:[#allocation7 + $0xc] ss:$16 sps:$4 sm:$0xff]   ;;  %1662 = vmatpush1.bf16.msra.mxu0 %v3057_v27 }
 0x244   : > { %1768 = vmatprep.subr.bf16.mxu1 %v3044_v56  ;;  %v3050_v10 = vld [vmem:[#allocation7 + $0x2c] ss:$16 sps:$4 sm:$0xff]   ;;  %v3054_v56 = vld [vmem:[#allocation7 + $0x48] ss:$16 sps:$4 sm:$0xff]  }
 0x245   : > { %v1143_v37 = vpack.c.bf16 %v959_v6, %v958_v49  ;;  %v3065_v49 = vld [vmem:[#allocation7 + $0x84] ss:$16 sps:$4 sm:$0xff]  }
 0x246   : > { %1663 = vmatprep.subr.bf16.mxu0 %v3065_v49 }
 0x247   : > { %2922 = vmatmul.mubr.msk.bf16.gmra.mrb[12].mxu1 %vm863_vm0, %v1143_v37 }
 0x292   : > { %v1058_v40 = vpop.xlane.xlu1 %1057 }
 0x293   : > { %3207 = vrcp.f32 %v1058_v40 }
 0x294   : > { %v1061_v22 = vpop.xlane.xlu0 %1060 }
 0x295   : > { %3209 = vrcp.f32 %v1061_v22  ;;  %v3048_v22 = vld [vmem:[#allocation7 + $0x28] ss:$16 sps:$4 sm:$0xff]  }
 0x296   : > { %v1064_v60 = vpop.xlane.xlu1 %1063 }
 0x297   : > { %3211 = vrcp.f32 %v1064_v60  ;;  %v3063_v60 = vld [vmem:[#allocation7 + $0x80] ss:$16 sps:$4 sm:$0xff]  }
 0x298   : > { %1664 = vmatpush1.bf16.msra.mxu0 %v3063_v60 }
 0x29a   : > { %v1070_v45 = vpop.xlane.xlu1 %1069 }
 0x29b   : > { %v1067_v11 = vpop.xlane.xlu0 %1066 }
 0x29c   : > { %3213 = vrcp.f32 %v1067_v11  ;;  %v3056_v11 = vld [vmem:[#allocation7 + $0x4c] ss:$16 sps:$4 sm:$0xff]  }
 0x29d   : > { %v3208_v46 = vpop.eup %3207  ;;  %3215 = vrcp.f32 %v1070_v45 }
 0x29e   : > { %v1076_v52 = vpop.xlane.xlu1 %1075  ;;  %v1120_v47 = vmul.f32 %v3208_v46, %v3873_v36  ;;  %v3071_v46 = vld [vmem:[#allocation7 + $0xa4] ss:$16 sps:$4 sm:$0xff]  }
 0x29f   : > { %v3210_v8 = vpop.eup %3209  ;;  %v1073_v9 = vpop.xlane.xlu0 %1072  ;;  %1665 = vmatprep.subr.bf16.mxu0 %v3071_v46 }
 0x2a0   : > { %3217 = vrcp.f32 %v1073_v9  ;;  %v1121_v25 = vmul.f32 %v3210_v8, %v3877_v54  ;;  %v3062_v9 = vld [vmem:[#allocation7 + $0x6c] ss:$16 sps:$4 sm:$0xff]   ;;  %1666 = vmatpush1.bf16.msra.mxu0 %v3069_v43 }
 0x2a1   : > { %3219 = vrcp.f32 %v1076_v52  ;;  %v3212_v39 = vpop.eup %3211 }
 0x2a2   : > { %v1082_v55 = vpop.xlane.xlu1 %1081  ;;  %v1276_v30 = vpack.c.bf16 %v1121_v25, %v1120_v47  ;;  %v1122_v54 = vmul.f32 %v3212_v39, %v3883_v63 }
 0x2a3   : > { %v1079_v32 = vpop.xlane.xlu0 %1078 }
 0x2a4   : > { %3221 = vrcp.f32 %v1079_v32  ;;  %2927 = vmatprep.mubr.msk.bf16.mxu1 %vm863_vm0, %v1276_v30  ;;  %v3068_v32 = vld [vmem:[#allocation7 + $0x8c] ss:$16 sps:$4 sm:$0xff]  }
 0x2a5   : > { %3223 = vrcp.f32 %v1082_v55  ;;  %v3060_v55 = vld [vmem:[#allocation7 + $0x68] ss:$16 sps:$4 sm:$0xff]  }
 0x2a6   : > { %v3214_v36 = vpop.eup %3213  ;;  %v1088_v2 = vpop.xlane.xlu1 %1087 }
 0x2a7   : > { %v1123_v62 = vmul.f32 %v3214_v36, %v3891_v20  ;;  %v1085_v23 = vpop.xlane.xlu0 %1084  ;;  %v3216_v0 = vpop.eup %3215 }
 0x2a8   : > { %3225 = vrcp.f32 %v1085_v23  ;;  %v1124_v63 = vmul.f32 %v3216_v0, %v3889_v15 }
 0x2a9   : > { %v1277_v31 = vpack.c.bf16 %v1123_v62, %v1122_v54  ;;  %3227 = vrcp.f32 %v1088_v2  ;;  %v3074_v54 = vld [vmem:[#allocation7 + $0xac] ss:$16 sps:$4 sm:$0xff]   ;;  %v3072_v2 = vld [vmem:[#allocation7 + $0xa8] ss:$16 sps:$4 sm:$0xff]  }
 0x2aa   : > { %v3218_v6 = vpop.eup %3217 }
 0x2ab   : > { %2928 = vmatmul.mubr.msk.bf16.vlgmr.msra.gmra.mrb[16].mxu1 %vm863_vm0, %v1277_v31  ;;  %v1091_v37 = vpop.xlane.xlu0 %1090  ;;  %v1125_v20 = vmul.f32 %v3218_v6, %v3901_v42  ;;  %v3220_v40 = vpop.eup %3219  ;;  %v4346_v6 = vmov 0  }
 0x2ac   : > { %3229 = vrcp.f32 %v1091_v37  ;;  %1769 = vmatpush1.bf16.msra.mxu1 %v3042_v38  ;;  %v1126_v52 = vmul.f32 %v3220_v40, %v3898_v29  ;;  %v1463_v37 = vld [vmem:[#allocation7 + $0xc0] sm:$0x33] }
 0x2ad   : > { %v1278_v45 = vpack.c.bf16 %v1125_v20, %v1124_v63  ;;  %1770 = vmatprep.subr.bf16.mxu1 %v3050_v10  ;;  %v1464_v63 = vld [vmem:[#allocation7 + $0xc8] sm:$0x33]  ;;  %v2653_v20 = vcombine.high %v1463_v37, %v1463_v37  ;;  %v2652_v40 = vcombine.low %v1463_v37, %v1463_v37  ;;  %v3087_v37 = vld [vmem:[%s4317_s9 + $0x50] sm:$0xff]  }
 0x2ae   : > { %v3222_v13 = vpop.eup %3221  ;;  %v1094_v17 = vpop.xlane.xlu1 %1093 }
 0x2af   : > { %2931 = vmatprep.mubr.msk.bf16.mxu1 %vm863_vm0, %v1278_v45  ;;  %v1127_v15 = vmul.f32 %v3222_v13, %v3911_v3  ;;  %v3224_v42 = vpop.eup %3223  ;;  %3231 = vrcp.f32 %v1094_v17  ;;  %2656 = vmatprep.subr.msk.bf16.mxu0 %vm1642_vm2, %v2653_v20 }
 0x2b0   : > { %1771 = vmatpush1.bf16.msra.mxu1 %v3048_v22  ;;  %v1128_v1 = vmul.f32 %v3224_v42, %v3908_v61 }
 0x2b1   : > { %v1279_v8 = vpack.c.bf16 %v1127_v15, %v1126_v52  ;;  %1772 = vmatprep.subr.bf16.mxu1 %v3056_v11 }
 0x2b2   : > { %v3226_v47 = vpop.eup %3225  ;;  %v1100_v25 = vpop.xlane.xlu1 %1099 }
 0x2b3   : > { %v1097_v41 = vpop.xlane.xlu0 %1096  ;;  %2932 = vmatmul.mubr.msk.bf16.gmra.mrb[20].mxu1 %vm863_vm0, %v1279_v8  ;;  %v1129_v29 = vmul.f32 %v3226_v47, %v3920_v26  ;;  %v3228_v3 = vpop.eup %3227  ;;  %v3066_v26 = vld [vmem:[#allocation7 + $0x88] ss:$16 sps:$4 sm:$0xff]  }
 0x2b4   : > { %3233 = vrcp.f32 %v1097_v41  ;;  %1773 = vmatpush1.bf16.msra.mxu1 %v3054_v56  ;;  %v1130_v24 = vmul.f32 %v3228_v3, %v3918_v21  ;;  %v3079_v41 = vld [vmem:[%s4317_s9 + $0x40] sm:$0xff]  }
 0x2b5   : > { %3235 = vrcp.f32 %v1100_v25  ;;  %v1280_v30 = vpack.c.bf16 %v1129_v29, %v1128_v1  ;;  %1774 = vmatprep.subr.bf16.mxu1 %v3062_v9  ;;  %v3080_v1 = vld [vmem:[%s4317_s9 + $0xc0] sm:$0xff]  }
 0x2b6   : > { %v3230_v39 = vpop.eup %3229 }
 0x2b7   : > { %v1103_v14 = vpop.xlane.xlu0 %1102  ;;  %2935 = vmatprep.mubr.msk.bf16.mxu1 %vm863_vm0, %v1280_v30  ;;  %v1131_v61 = vmul.f32 %v3230_v39, %v3926_v53 }
 0x2b8   : > { %3237 = vrcp.f32 %v1103_v14  ;;  %1775 = vmatpush1.bf16.msra.mxu1 %v3060_v55 }
 0x2b9   : > { %v1281_v36 = vpack.c.bf16 %v1131_v61, %v1130_v24  ;;  %1776 = vmatprep.subr.bf16.mxu1 %v3068_v32  ;;  %v3232_v62 = vpop.eup %3231 }
 0x2ba   : > { %v1132_v38 = vmul.f32 %v3232_v62, %v3930_v7  ;;  %v2655_v7 = vcombine.high %v1464_v63, %v1464_v63  ;;  %v3083_v62 = vld [vmem:[%s4317_s9 + $0x48] sm:$0xff]  }
 0x2bb   : > { %2936 = vmatmul.mubr.msk.bf16.gmra.mrb[24].mxu1 %vm863_vm0, %v1281_v36  ;;  %v3081_v36 = vld [vmem:[%s4317_s9] sm:$0xff]  }
 0x2bc   : > { %1777 = vmatpush1.bf16.msra.mxu1 %v3066_v26 }
 0x2bd   : > { %1778 = vmatprep.subr.bf16.mxu1 %v3074_v54  ;;  %v3082_v54 = vld [vmem:[%s4317_s9 + $0x80] sm:$0xff]  }
 0x2be   : > { %v3234_v23 = vpop.eup %3233 }
 0x2bf   : > { %v3236_v0 = vpop.eup %3235  ;;  %v1133_v27 = vmul.f32 %v3234_v23, %v3936_v28  ;;  %v2654_v28 = vcombine.low %v1464_v63, %v1464_v63  ;;  %v3088_v63 = vld [vmem:[%s4317_s9 + $0xd0] sm:$0xff]  }
 0x2c0   : > { %1779 = vmatpush1.bf16.msra.mxu1 %v3072_v2  ;;  %v1134_v31 = vmul.f32 %v3236_v0, %v3934_v18  ;;  %v1644_v18 = vsel %vm1642_vm2, %v2652_v40, 0  ;;  %v3084_v2 = vld [vmem:[%s4317_s9 + $0xc8] sm:$0xff]  }
 0x2c1   : > { %v1282_v53 = vpack.c.bf16 %v1133_v27, %v1132_v38  ;;  %2665 = vmatprep.subr.msk.bf16.mxu1 %vm1642_vm2, %v2655_v7  ;;  %v1650_v60 = vsel %vm1642_vm2, %v2654_v28, 0  ;;  %1668 = vmatpush1.bf16.msra.mxu0 %v1644_v18  ;;  %v3089_v28 = vld [vmem:[%s4317_s9 + $0x10] sm:$0xff]   ;;  %v3091_v18 = vld [vmem:[%s4317_s9 + $0x58] sm:$0xff]  }
 0x2c2   : > { %v3238_v21 = vpop.eup %3237  ;;  %2747 = vmatprep.subr.bf16.mxu0 %v3079_v41 }
 0x2c3   : > { %v1135_v10 = vmul.f32 %v3238_v21, %v3942_v57  ;;  %2939 = vmatprep.mubr.msk.bf16.mxu1 %vm863_vm0, %v1282_v53  ;;  %v3085_v53 = vld [vmem:[%s4317_s9 + $0x8] sm:$0xff]  }
 0x2c4   : > { %1781 = vmatpush1.bf16.msra.mxu1 %v1650_v60  ;;  %v3092_v60 = vld [vmem:[%s4317_s9 + $0xd8] sm:$0xff]  }
 0x2c5   : > { %v1283_v49 = vpack.c.bf16 %v1135_v10, %v1134_v31  ;;  %2811 = vmatprep.subr.bf16.mxu1 %v3080_v1  ;;  %v3086_v31 = vld [vmem:[%s4317_s9 + $0x88] sm:$0xff]   ;;  %v3096_v1 = vld [vmem:[%s4317_s9 + $0xe0] sm:$0xff]  }
 0x2c7   : > { %2940 = vmatmul.mubr.msk.bf16.gmra.mrb[28].mxu1 %vm863_vm0, %v1283_v49 }
 0x2c8   : > { %1800 = vmatprep.mubr.bf16.mxu1 %v4346_v6 }
 0x302   : > { %v2911_v22 = vpop.f32.mrb[0].mxu1 }
 0x303   : > { %v1213_v57 = vpop.f32.mrb[1].mxu1 }
 0x304   : > { %v2912_v45 = vpop.f32.mrb[2].mxu1 }
 0x305   : > { %v1216_v11 = vpop.f32.mrb[3].mxu1 }
 0x30a   : > { %v2915_v46 = vpop.f32.mrb[4].mxu1 }
 0x30b   : > { %v1229_v13 = vpop.f32.mrb[5].mxu1 }
 0x30c   : > { %v2916_v17 = vpop.f32.mrb[6].mxu1 }
 0x30d   : > { %v1232_v52 = vpop.f32.mrb[7].mxu1 }
 0x312   : > { %v2919_v15 = vpop.f32.mrb[8].mxu1 }
 0x313   : > { %v3996_v42 = vpop.f32.mrb[9].mxu1 }
 0x314   : > { %v3998_v56 = vpop.f32.mrb[10].mxu1 }
 0x315   : > { %v4000_v43 = vpop.f32.mrb[11].mxu1 }
 0x31a   : > { %v4002_v8 = vpop.f32.mrb[12].mxu1 }
 0x31b   : > { %v4004_v9 = vpop.f32.mrb[13].mxu1 }
 0x31c   : > { %v4006_v47 = vpop.f32.mrb[14].mxu1 }
 0x31d   : > { %v4008_v25 = vpop.f32.mrb[15].mxu1 }
 0x37e   : > { %v2929_v29 = vpop.f32.mrb[16].mxu1 }
 0x37f   : > { %v1417_v3 = vmul.f32 %v2929_v29, %v2911_v22  ;;  %v1352_v55 = vpop.f32.mrb[17].mxu1  ;;  %v3090_v22 = vld [vmem:[%s4317_s9 + $0x90] sm:$0xff]  }
 0x380   : > { %v1415_v30 = vmul.f32 %v1352_v55, %v1213_v57  ;;  %v2930_v32 = vpop.f32.mrb[18].mxu1 }
 0x381   : > { %v1418_v39 = vmul.f32 %v2930_v32, %v2912_v45  ;;  %v1355_v14 = vpop.f32.mrb[19].mxu1  ;;  %v3099_v32 = vld [vmem:[%s4317_s9 + $0x68] sm:$0xff]  }
 0x382   : > { %v1416_v24 = vmul.f32 %v1355_v14, %v1216_v11  ;;  %v3102_v14 = vld [vmem:[%s4317_s9 + $0xa8] sm:$0xff]  }
 0x383   : > { %v1432_v61 = vpack.c.bf16 %v1418_v39, %v1417_v3  ;;  %v3101_v39 = vld [vmem:[%s4317_s9 + $0x28] sm:$0xff]  }
 0x384   : > { %v1431_v26 = vpack.c.bf16 %v1416_v24, %v1415_v30  ;;  %v3098_v30 = vld [vmem:[%s4317_s9 + $0xa0] sm:$0xff]  }
 0x386   : > { %v2933_v23 = vpop.f32.mrb[20].mxu1  ;;  %2657 = vmatmul.mubr.msk.bf16.vlgmr.msra.gmra.mrb[16].mxu0 %vm1617_vm3, %v1431_v26  ;;  %2666 = vmatmul.mubr.msk.bf16.vlgmr.msra.gmra.mrb[32].mxu1 %vm1617_vm3, %v1431_v26  ;;  %v3104_v26 = vld [vmem:[%s4317_s9 + $0xf0] sm:$0xff]  }
 0x387   : > { %v1421_v0 = vmul.f32 %v2933_v23, %v2915_v46  ;;  %v1368_v38 = vpop.f32.mrb[21].mxu1  ;;  %1697 = vmatprep.mubr.bf16.mxu0 %v4346_v6  ;;  %1810 = vmatprep.mubr.bf16.mxu1 %v4346_v6 }
 0x388   : > { %v1419_v27 = vmul.f32 %v1368_v38, %v1229_v13  ;;  %v2934_v21 = vpop.f32.mrb[22].mxu1  ;;  %2748 = vmatpush3.bf16.msra.mxu0 %v3081_v36  ;;  %2812 = vmatpush3.bf16.msra.mxu1 %v3082_v54  ;;  %v3105_v38 = vld [vmem:[%s4317_s9 + $0x30] sm:$0xff]  }
 0x389   : > { %v1422_v10 = vmul.f32 %v2934_v21, %v2916_v17  ;;  %v1371_v49 = vpop.f32.mrb[23].mxu1  ;;  %2749 = vmatprep.subr.bf16.mxu0 %v3083_v62  ;;  %2813 = vmatprep.subr.bf16.mxu1 %v3084_v2  ;;  %v3093_v17 = vld [vmem:[%s4317_s9 + $0x18] sm:$0xff]  }
 0x38a   : > { %v1420_v20 = vmul.f32 %v1371_v49, %v1232_v52  ;;  %v3094_v52 = vld [vmem:[%s4317_s9 + $0x98] sm:$0xff]  }
 0x38b   : > { %v4044_v7 = vpack.c.bf16 %v1422_v10, %v1421_v0 }
 0x38c   : > { %v1433_v40 = vpack.c.bf16 %v1420_v20, %v1419_v27  ;;  %2750 = vmatpush3.bf16.msra.mxu0 %v3085_v53  ;;  %2814 = vmatpush3.bf16.msra.mxu1 %v3086_v31  ;;  %v3106_v27 = vld [vmem:[%s4317_s9 + $0xb0] sm:$0xff]   ;;  %v3109_v53 = vld [vmem:[%s4317_s9 + $0x38] sm:$0xff]   ;;  %v1467_v31 = vlaneseq }
 0x38d   : > { %2751 = vmatprep.subr.bf16.mxu0 %v3087_v37  ;;  %2815 = vmatprep.subr.bf16.mxu1 %v3088_v63  ;;  %v1465_v63 = vld [vmem:[%s4316_s8] sm:$0xf] }
 0x38e   : > { %v2937_v57 = vpop.f32.mrb[24].mxu1  ;;  %2658 = vmatmul.mubr.msk.bf16.gmra.mrb[20].mxu0 %vm1617_vm3, %v1432_v61  ;;  %2667 = vmatmul.mubr.msk.bf16.gmra.mrb[36].mxu1 %vm1617_vm3, %v1432_v61  ;;  %v3103_v61 = vld [vmem:[%s4317_s9 + $0x70] sm:$0xff]   ;;  %v1468_v10 = vshrl.u32 %v1467_v31, 7 }
 0x38f   : > { %v1425_v45 = vmul.f32 %v2937_v57, %v2919_v15  ;;  %v1384_v11 = vpop.f32.mrb[25].mxu1  ;;  %1707 = vmatprep.mubr.bf16.mxu0 %v4346_v6  ;;  %1820 = vmatprep.mubr.bf16.mxu1 %v4346_v6 }
 0x390   : > { %v1423_v46 = vmul.f32 %v1384_v11, %v3996_v42  ;;  %v2938_v13 = vpop.f32.mrb[26].mxu1  ;;  %2752 = vmatpush3.bf16.msra.mxu0 %v3089_v28  ;;  %2816 = vmatpush3.bf16.msra.mxu1 %v3090_v22  ;;  %v3095_v42 = vld [vmem:[%s4317_s9 + $0x60] sm:$0xff]   ;;  %v1469_v49 = vsub.s32 0, %v1468_v10  ;;  %v1477_v37 = vsub.s32 2, %v1468_v10  ;;  %v1473_v20 = vsub.s32 1, %v1468_v10 }
 0x391   : > { %v1426_v15 = vmul.f32 %v2938_v13, %v3998_v56  ;;  %v1387_v41 = vpop.f32.mrb[27].mxu1  ;;  %2753 = vmatprep.subr.bf16.mxu0 %v3091_v18  ;;  %2817 = vmatprep.subr.bf16.mxu1 %v3092_v60  ;;  %v3097_v56 = vld [vmem:[%s4317_s9 + $0x20] sm:$0xff]  }
 0x392   : > { %v1424_v29 = vmul.f32 %v1387_v41, %v4000_v43  ;;  %v3100_v43 = vld [vmem:[%s4317_s9 + $0xe8] sm:$0xff]   ;;  %v4152_v28 = vrot.slane %v1465_v63, %v1477_v37  ;;  %v4154_v22 = vrot.slane %v1465_v63, %v1473_v20 }
 0x393   : > { %v1436_v3 = vpack.c.bf16 %v1426_v15, %v1425_v45 }
 0x394   : > { %v1435_v55 = vpack.c.bf16 %v1424_v29, %v1423_v46  ;;  %2754 = vmatpush3.bf16.msra.mxu0 %v3093_v17  ;;  %2818 = vmatpush3.bf16.msra.mxu1 %v3094_v52 }
 0x395   : > { %2755 = vmatprep.subr.bf16.mxu0 %v3095_v42  ;;  %2819 = vmatprep.subr.bf16.mxu1 %v3096_v1 }
 0x396   : > { %2659 = vmatmul.mubr.msk.bf16.gmra.mrb[24].mxu0 %vm1617_vm3, %v1433_v40  ;;  %2668 = vmatmul.mubr.msk.bf16.gmra.mrb[40].mxu1 %vm1617_vm3, %v1433_v40  ;;  %v4150_v40 = vrot.slane %v1465_v63, %v1469_v49 }
 0x397   : > { %1717 = vmatprep.mubr.bf16.mxu0 %v4346_v6  ;;  %1830 = vmatprep.mubr.bf16.mxu1 %v4346_v6 }
 0x398   : > { %2756 = vmatpush3.bf16.msra.mxu0 %v3097_v56  ;;  %2820 = vmatpush3.bf16.msra.mxu1 %v3098_v30 }
 0x399   : > { %2757 = vmatprep.subr.bf16.mxu0 %v3099_v32  ;;  %2821 = vmatprep.subr.bf16.mxu1 %v3100_v43 }
 0x39a   : > { %v2941_v24 = vpop.f32.mrb[28].mxu1 }
 0x39b   : > { %v1429_v36 = vmul.f32 %v2941_v24, %v4002_v8  ;;  %v1400_v54 = vpop.f32.mrb[29].mxu1 }
 0x39c   : > { %v1427_v62 = vmul.f32 %v1400_v54, %v4004_v9  ;;  %v2942_v2 = vpop.f32.mrb[30].mxu1  ;;  %2758 = vmatpush3.bf16.msra.mxu0 %v3101_v39  ;;  %2822 = vmatpush3.bf16.msra.mxu1 %v3102_v14 }
 0x39d   : > { %v1430_v23 = vmul.f32 %v2942_v2, %v4006_v47  ;;  %v1403_v0 = vpop.f32.mrb[31].mxu1  ;;  %2759 = vmatprep.subr.bf16.mxu0 %v3103_v61  ;;  %2823 = vmatprep.subr.bf16.mxu1 %v3104_v26  ;;  %v3107_v47 = vld [vmem:[%s4317_s9 + $0x78] sm:$0xff]  }
 0x39e   : > { %v1428_v21 = vmul.f32 %v1403_v0, %v4008_v25  ;;  %2660 = vmatmul.mubr.msk.bf16.gmra.mrb[28].mxu0 %vm1617_vm3, %v4044_v7  ;;  %2669 = vmatmul.mubr.msk.bf16.gmra.mrb[44].mxu1 %vm1617_vm3, %v4044_v7  ;;  %v3108_v25 = vld [vmem:[%s4317_s9 + $0xf8] sm:$0xff]   ;;  %v1481_v7 = vsub.s32 3, %v1468_v10 }
 0x39f   : > { %v1438_v8 = vpack.c.bf16 %v1430_v23, %v1429_v36  ;;  %1727 = vmatprep.mubr.bf16.mxu0 %v4346_v6  ;;  %1840 = vmatprep.mubr.bf16.mxu1 %v4346_v6 }
 0x3a0   : > { %v1437_v9 = vpack.c.bf16 %v1428_v21, %v1427_v62  ;;  %2760 = vmatpush3.bf16.msra.mxu0 %v3105_v38  ;;  %2824 = vmatpush3.bf16.msra.mxu1 %v3106_v27  ;;  %v4156_v18 = vrot.slane %v1465_v63, %v1481_v7 }
 0x3a1   : > { %2761 = vmatprep.subr.bf16.mxu0 %v3107_v47  ;;  %2825 = vmatprep.subr.bf16.mxu1 %v3108_v25 }
 0x3a4   : > { %2762 = vmatpush3.bf16.msra.mxu0 %v3109_v53 }
 0x3a6   : > { %2661 = vmatmul.mubr.msk.bf16.gmra.mrb[32].mxu0 %vm1617_vm3, %v1435_v55  ;;  %2670 = vmatmul.mubr.msk.bf16.gmra.mrb[48].mxu1 %vm1617_vm3, %v1435_v55 }
 0x3a7   : > { %1737 = vmatprep.mubr.bf16.mxu0 %v4346_v6  ;;  %1850 = vmatprep.mubr.bf16.mxu1 %v4346_v6 }
 0x3ae   : > { %2662 = vmatmul.mubr.msk.bf16.gmra.mrb[36].mxu0 %vm1617_vm3, %v1436_v3  ;;  %2671 = vmatmul.mubr.msk.bf16.gmra.mrb[52].mxu1 %vm1617_vm3, %v1436_v3 }
 0x3af   : > { %1747 = vmatprep.mubr.bf16.mxu0 %v4346_v6  ;;  %1860 = vmatprep.mubr.bf16.mxu1 %v4346_v6 }
 0x3b6   : > { %2663 = vmatmul.mubr.msk.bf16.gmra.mrb[40].mxu0 %vm1617_vm3, %v1437_v9  ;;  %2672 = vmatmul.mubr.msk.bf16.gmra.mrb[56].mxu1 %vm1617_vm3, %v1437_v9 }
 0x3b7   : > { %1757 = vmatprep.mubr.bf16.mxu0 %v4346_v6  ;;  %1870 = vmatprep.mubr.bf16.mxu1 %v4346_v6  ;;  %v3110_v6 = vld [vmem:[%s4317_s9 + $0xb8] sm:$0xff]  }
 0x3b8   : > { %2826 = vmatpush3.bf16.msra.mxu1 %v3110_v6 }
 0x3be   : > { %2664 = vmatmul.mubr.msk.bf16.gmra.mrb[44].mxu0 %vm1617_vm3, %v1438_v8  ;;  %2673 = vmatmul.mubr.msk.bf16.gmra.mrb[60].mxu1 %vm1617_vm3, %v1438_v8 }
 0x459   : > { %v1689_v60 = vpop.f32.mrb[16].mxu0  ;;  %v1802_v57 = vpop.f32.mrb[32].mxu1 }
 0x45a   : > { %v1690_v45 = vadd.f32 %v1689_v60, %v4150_v40  ;;  %v1803_v11 = vadd.f32 %v1802_v57, %v4152_v28  ;;  %v1691_v46 = vpop.f32.mrb[17].mxu0  ;;  %v1804_v13 = vpop.f32.mrb[33].mxu1 }
 0x45b   : > { %v1692_v17 = vadd.f32 %v1691_v46, %v4154_v22  ;;  %v1805_v52 = vadd.f32 %v1804_v13, %v4156_v18  ;;  %v1693_v15 = vpop.f32.mrb[18].mxu0  ;;  %v1806_v41 = vpop.f32.mrb[34].mxu1 }
 0x45c   : > { %v1694_v42 = vadd.f32 %v1693_v15, %v4150_v40  ;;  %v1807_v1 = vadd.f32 %v1806_v41, %v4152_v28  ;;  %v1695_v29 = vpop.f32.mrb[19].mxu0  ;;  %v1808_v3 = vpop.f32.mrb[35].mxu1  ;;  %v1881_v30 = vmax.f32 %v1690_v45, 0.0  ;;  %v1883_v32 = vmax.f32 %v1803_v11, 0.0 }
 0x45d   : > { %v1696_v55 = vadd.f32 %v1695_v29, %v4154_v22  ;;  %v1809_v56 = vadd.f32 %v1808_v3, %v4156_v18  ;;  %v1882_v14 = vmax.f32 %v1692_v17, 0.0  ;;  %v1884_v24 = vmax.f32 %v1805_v52, 0.0 }
 0x45e   : > { %v1885_v43 = vmax.f32 %v1694_v42, 0.0  ;;  %v1887_v39 = vmax.f32 %v1807_v1, 0.0 }
 0x45f   : > { %v1886_v61 = vmax.f32 %v1696_v55, 0.0  ;;  %v1888_v26 = vmax.f32 %v1809_v56, 0.0 }
 0x460   : > { %v1945_v36 = vpack.c.bf16 %v1885_v43, %v1881_v30  ;;  %v1947_v54 = vpack.c.bf16 %v1887_v39, %v1883_v32 }
 0x461   : > { %v1946_v62 = vpack.c.bf16 %v1886_v61, %v1882_v14  ;;  %v1948_v2 = vpack.c.bf16 %v1888_v26, %v1884_v24  ;;  %v1699_v23 = vpop.f32.mrb[20].mxu0  ;;  %v1812_v0 = vpop.f32.mrb[36].mxu1 }
 0x462   : > { %v1700_v38 = vadd.f32 %v1699_v23, %v4150_v40  ;;  %v1813_v27 = vadd.f32 %v1812_v0, %v4152_v28  ;;  %v1701_v21 = vpop.f32.mrb[21].mxu0  ;;  %v1814_v8 = vpop.f32.mrb[37].mxu1 }
 0x463   : > { %v1702_v9 = vadd.f32 %v1701_v21, %v4154_v22  ;;  %v1815_v47 = vadd.f32 %v1814_v8, %v4156_v18  ;;  %v1703_v25 = vpop.f32.mrb[22].mxu0  ;;  %v1816_v53 = vpop.f32.mrb[38].mxu1  ;;  %2265 = vmatprep.mubr.bf16.mxu0 %v1946_v62  ;;  %2362 = vmatprep.mubr.bf16.mxu1 %v1948_v2 }
 0x464   : > { %v1704_v6 = vadd.f32 %v1703_v25, %v4150_v40  ;;  %v1817_v31 = vadd.f32 %v1816_v53, %v4152_v28  ;;  %v1705_v10 = vpop.f32.mrb[23].mxu0  ;;  %v1818_v49 = vpop.f32.mrb[39].mxu1  ;;  %2266 = vmatmul.mubr.bf16.vlgmr.msra.gmra.mrb[48].mxu0 %v1945_v36  ;;  %2363 = vmatmul.mubr.bf16.vlgmr.msra.gmra.mrb[64].mxu1 %v1947_v54  ;;  %v1889_v20 = vmax.f32 %v1700_v38, 0.0  ;;  %v1891_v7 = vmax.f32 %v1813_v27, 0.0 }
 0x465   : > { %v1706_v37 = vadd.f32 %v1705_v10, %v4154_v22  ;;  %v1819_v63 = vadd.f32 %v1818_v49, %v4156_v18  ;;  %v1890_v45 = vmax.f32 %v1702_v9, 0.0  ;;  %v1892_v11 = vmax.f32 %v1815_v47, 0.0 }
 0x466   : > { %v1893_v60 = vmax.f32 %v1704_v6, 0.0  ;;  %v1895_v57 = vmax.f32 %v1817_v31, 0.0 }
 0x467   : > { %v1894_v46 = vmax.f32 %v1706_v37, 0.0  ;;  %v1896_v13 = vmax.f32 %v1819_v63, 0.0 }
 0x468   : > { %v1949_v17 = vpack.c.bf16 %v1893_v60, %v1889_v20  ;;  %v1951_v52 = vpack.c.bf16 %v1895_v57, %v1891_v7 }
 0x469   : > { %v1950_v15 = vpack.c.bf16 %v1894_v46, %v1890_v45  ;;  %v1952_v41 = vpack.c.bf16 %v1896_v13, %v1892_v11  ;;  %v1709_v42 = vpop.f32.mrb[24].mxu0  ;;  %v1822_v1 = vpop.f32.mrb[40].mxu1 }
 0x46a   : > { %v1710_v29 = vadd.f32 %v1709_v42, %v4150_v40  ;;  %v1823_v3 = vadd.f32 %v1822_v1, %v4152_v28  ;;  %v1711_v55 = vpop.f32.mrb[25].mxu0  ;;  %v1824_v56 = vpop.f32.mrb[41].mxu1 }
 0x46b   : > { %v1712_v30 = vadd.f32 %v1711_v55, %v4154_v22  ;;  %v1825_v32 = vadd.f32 %v1824_v56, %v4156_v18  ;;  %v1713_v43 = vpop.f32.mrb[26].mxu0  ;;  %v1826_v39 = vpop.f32.mrb[42].mxu1  ;;  %2273 = vmatprep.mubr.bf16.mxu0 %v1950_v15  ;;  %2370 = vmatprep.mubr.bf16.mxu1 %v1952_v41 }
 0x46c   : > { %v1714_v14 = vadd.f32 %v1713_v43, %v4150_v40  ;;  %v1827_v24 = vadd.f32 %v1826_v39, %v4152_v28  ;;  %v1715_v61 = vpop.f32.mrb[27].mxu0  ;;  %v1828_v26 = vpop.f32.mrb[43].mxu1  ;;  %2274 = vmatmul.mubr.bf16.gmra.mrb[52].mxu0 %v1949_v17  ;;  %2371 = vmatmul.mubr.bf16.gmra.mrb[68].mxu1 %v1951_v52  ;;  %v1897_v62 = vmax.f32 %v1710_v29, 0.0  ;;  %v1899_v2 = vmax.f32 %v1823_v3, 0.0 }
 0x46d   : > { %v1716_v36 = vadd.f32 %v1715_v61, %v4154_v22  ;;  %v1829_v54 = vadd.f32 %v1828_v26, %v4156_v18  ;;  %v1898_v38 = vmax.f32 %v1712_v30, 0.0  ;;  %v1900_v27 = vmax.f32 %v1825_v32, 0.0 }
 0x46e   : > { %v1901_v23 = vmax.f32 %v1714_v14, 0.0  ;;  %v1903_v0 = vmax.f32 %v1827_v24, 0.0 }
 0x46f   : > { %v1902_v21 = vmax.f32 %v1716_v36, 0.0  ;;  %v1904_v8 = vmax.f32 %v1829_v54, 0.0 }
 0x470   : > { %v1953_v9 = vpack.c.bf16 %v1901_v23, %v1897_v62  ;;  %v1955_v47 = vpack.c.bf16 %v1903_v0, %v1899_v2 }
 0x471   : > { %v1954_v25 = vpack.c.bf16 %v1902_v21, %v1898_v38  ;;  %v1956_v53 = vpack.c.bf16 %v1904_v8, %v1900_v27  ;;  %v1719_v6 = vpop.f32.mrb[28].mxu0  ;;  %v1832_v31 = vpop.f32.mrb[44].mxu1 }
 0x472   : > { %v1720_v10 = vadd.f32 %v1719_v6, %v4150_v40  ;;  %v1833_v49 = vadd.f32 %v1832_v31, %v4152_v28  ;;  %v1721_v37 = vpop.f32.mrb[29].mxu0  ;;  %v1834_v63 = vpop.f32.mrb[45].mxu1 }
 0x473   : > { %v1722_v20 = vadd.f32 %v1721_v37, %v4154_v22  ;;  %v1835_v7 = vadd.f32 %v1834_v63, %v4156_v18  ;;  %v1723_v60 = vpop.f32.mrb[30].mxu0  ;;  %v1836_v57 = vpop.f32.mrb[46].mxu1  ;;  %2281 = vmatprep.mubr.bf16.mxu0 %v1954_v25  ;;  %2378 = vmatprep.mubr.bf16.mxu1 %v1956_v53 }
 0x474   : > { %v1724_v45 = vadd.f32 %v1723_v60, %v4150_v40  ;;  %v1837_v11 = vadd.f32 %v1836_v57, %v4152_v28  ;;  %v1725_v46 = vpop.f32.mrb[31].mxu0  ;;  %v1838_v13 = vpop.f32.mrb[47].mxu1  ;;  %2282 = vmatmul.mubr.bf16.gmra.mrb[56].mxu0 %v1953_v9  ;;  %2379 = vmatmul.mubr.bf16.gmra.mrb[72].mxu1 %v1955_v47  ;;  %v1905_v15 = vmax.f32 %v1720_v10, 0.0  ;;  %v1907_v41 = vmax.f32 %v1833_v49, 0.0 }
 0x475   : > { %v1726_v17 = vadd.f32 %v1725_v46, %v4154_v22  ;;  %v1839_v52 = vadd.f32 %v1838_v13, %v4156_v18  ;;  %v1906_v29 = vmax.f32 %v1722_v20, 0.0  ;;  %v1908_v3 = vmax.f32 %v1835_v7, 0.0 }
 0x476   : > { %v1909_v42 = vmax.f32 %v1724_v45, 0.0  ;;  %v1911_v1 = vmax.f32 %v1837_v11, 0.0 }
 0x477   : > { %v1910_v55 = vmax.f32 %v1726_v17, 0.0  ;;  %v1912_v56 = vmax.f32 %v1839_v52, 0.0 }
 0x478   : > { %v1957_v30 = vpack.c.bf16 %v1909_v42, %v1905_v15  ;;  %v1959_v32 = vpack.c.bf16 %v1911_v1, %v1907_v41 }
 0x479   : > { %v1958_v43 = vpack.c.bf16 %v1910_v55, %v1906_v29  ;;  %v1960_v39 = vpack.c.bf16 %v1912_v56, %v1908_v3  ;;  %v1729_v14 = vpop.f32.mrb[32].mxu0  ;;  %v1842_v24 = vpop.f32.mrb[48].mxu1 }
 0x47a   : > { %v1730_v61 = vadd.f32 %v1729_v14, %v4150_v40  ;;  %v1843_v26 = vadd.f32 %v1842_v24, %v4152_v28  ;;  %v1731_v36 = vpop.f32.mrb[33].mxu0  ;;  %v1844_v54 = vpop.f32.mrb[49].mxu1 }
 0x47b   : > { %v1732_v62 = vadd.f32 %v1731_v36, %v4154_v22  ;;  %v1845_v2 = vadd.f32 %v1844_v54, %v4156_v18  ;;  %v1733_v23 = vpop.f32.mrb[34].mxu0  ;;  %v1846_v0 = vpop.f32.mrb[50].mxu1  ;;  %2289 = vmatprep.mubr.bf16.mxu0 %v1958_v43  ;;  %2386 = vmatprep.mubr.bf16.mxu1 %v1960_v39 }
 0x47c   : > { %v1734_v38 = vadd.f32 %v1733_v23, %v4150_v40  ;;  %v1847_v27 = vadd.f32 %v1846_v0, %v4152_v28  ;;  %v1735_v21 = vpop.f32.mrb[35].mxu0  ;;  %v1848_v8 = vpop.f32.mrb[51].mxu1  ;;  %2290 = vmatmul.mubr.bf16.gmra.mrb[60].mxu0 %v1957_v30  ;;  %2387 = vmatmul.mubr.bf16.gmra.mrb[76].mxu1 %v1959_v32  ;;  %v1913_v25 = vmax.f32 %v1730_v61, 0.0  ;;  %v1915_v53 = vmax.f32 %v1843_v26, 0.0 }
 0x47d   : > { %v1736_v9 = vadd.f32 %v1735_v21, %v4154_v22  ;;  %v1849_v47 = vadd.f32 %v1848_v8, %v4156_v18  ;;  %v1914_v10 = vmax.f32 %v1732_v62, 0.0  ;;  %v1916_v49 = vmax.f32 %v1845_v2, 0.0 }
 0x47e   : > { %v1917_v6 = vmax.f32 %v1734_v38, 0.0  ;;  %v1919_v31 = vmax.f32 %v1847_v27, 0.0 }
 0x47f   : > { %v1918_v37 = vmax.f32 %v1736_v9, 0.0  ;;  %v1920_v63 = vmax.f32 %v1849_v47, 0.0 }
 0x480   : > { %v1961_v20 = vpack.c.bf16 %v1917_v6, %v1913_v25  ;;  %v1963_v7 = vpack.c.bf16 %v1919_v31, %v1915_v53 }
 0x481   : > { %v1962_v60 = vpack.c.bf16 %v1918_v37, %v1914_v10  ;;  %v1964_v57 = vpack.c.bf16 %v1920_v63, %v1916_v49  ;;  %v1739_v45 = vpop.f32.mrb[36].mxu0  ;;  %v1852_v11 = vpop.f32.mrb[52].mxu1 }
 0x482   : > { %v1740_v46 = vadd.f32 %v1739_v45, %v4150_v40  ;;  %v1853_v13 = vadd.f32 %v1852_v11, %v4152_v28  ;;  %v1741_v17 = vpop.f32.mrb[37].mxu0  ;;  %v1854_v52 = vpop.f32.mrb[53].mxu1 }
 0x483   : > { %v1742_v15 = vadd.f32 %v1741_v17, %v4154_v22  ;;  %v1855_v41 = vadd.f32 %v1854_v52, %v4156_v18  ;;  %v1743_v42 = vpop.f32.mrb[38].mxu0  ;;  %v1856_v1 = vpop.f32.mrb[54].mxu1  ;;  %2297 = vmatprep.mubr.bf16.mxu0 %v1962_v60  ;;  %2394 = vmatprep.mubr.bf16.mxu1 %v1964_v57 }
 0x484   : > { %v1744_v29 = vadd.f32 %v1743_v42, %v4150_v40  ;;  %v1857_v3 = vadd.f32 %v1856_v1, %v4152_v28  ;;  %v1745_v55 = vpop.f32.mrb[39].mxu0  ;;  %v1858_v56 = vpop.f32.mrb[55].mxu1  ;;  %2298 = vmatmul.mubr.bf16.gmra.mrb[64].mxu0 %v1961_v20  ;;  %2395 = vmatmul.mubr.bf16.gmra.mrb[80].mxu1 %v1963_v7  ;;  %v1921_v43 = vmax.f32 %v1740_v46, 0.0  ;;  %v1923_v39 = vmax.f32 %v1853_v13, 0.0 }
 0x485   : > { %v1746_v30 = vadd.f32 %v1745_v55, %v4154_v22  ;;  %v1859_v32 = vadd.f32 %v1858_v56, %v4156_v18  ;;  %v1922_v61 = vmax.f32 %v1742_v15, 0.0  ;;  %v1924_v26 = vmax.f32 %v1855_v41, 0.0 }
 0x486   : > { %v1925_v14 = vmax.f32 %v1744_v29, 0.0  ;;  %v1927_v24 = vmax.f32 %v1857_v3, 0.0 }
 0x487   : > { %v1926_v36 = vmax.f32 %v1746_v30, 0.0  ;;  %v1928_v54 = vmax.f32 %v1859_v32, 0.0 }
 0x488   : > { %v1965_v62 = vpack.c.bf16 %v1925_v14, %v1921_v43  ;;  %v1967_v2 = vpack.c.bf16 %v1927_v24, %v1923_v39 }
 0x489   : > { %v1966_v23 = vpack.c.bf16 %v1926_v36, %v1922_v61  ;;  %v1968_v0 = vpack.c.bf16 %v1928_v54, %v1924_v26  ;;  %v1749_v38 = vpop.f32.mrb[40].mxu0  ;;  %v1862_v27 = vpop.f32.mrb[56].mxu1 }
 0x48a   : > { %v1750_v21 = vadd.f32 %v1749_v38, %v4150_v40  ;;  %v1863_v8 = vadd.f32 %v1862_v27, %v4152_v28  ;;  %v1751_v9 = vpop.f32.mrb[41].mxu0  ;;  %v1864_v47 = vpop.f32.mrb[57].mxu1 }
 0x48b   : > { %v1752_v25 = vadd.f32 %v1751_v9, %v4154_v22  ;;  %v1865_v53 = vadd.f32 %v1864_v47, %v4156_v18  ;;  %v1753_v6 = vpop.f32.mrb[42].mxu0  ;;  %v1866_v31 = vpop.f32.mrb[58].mxu1  ;;  %2305 = vmatprep.mubr.bf16.mxu0 %v1966_v23  ;;  %2402 = vmatprep.mubr.bf16.mxu1 %v1968_v0 }
 0x48c   : > { %v1754_v10 = vadd.f32 %v1753_v6, %v4150_v40  ;;  %v1867_v49 = vadd.f32 %v1866_v31, %v4152_v28  ;;  %v1755_v37 = vpop.f32.mrb[43].mxu0  ;;  %v1868_v63 = vpop.f32.mrb[59].mxu1  ;;  %2306 = vmatmul.mubr.bf16.gmra.mrb[68].mxu0 %v1965_v62  ;;  %2403 = vmatmul.mubr.bf16.gmra.mrb[84].mxu1 %v1967_v2  ;;  %v1929_v60 = vmax.f32 %v1750_v21, 0.0  ;;  %v1931_v57 = vmax.f32 %v1863_v8, 0.0 }
 0x48d   : > { %v1756_v20 = vadd.f32 %v1755_v37, %v4154_v22  ;;  %v1869_v7 = vadd.f32 %v1868_v63, %v4156_v18  ;;  %v1930_v46 = vmax.f32 %v1752_v25, 0.0  ;;  %v1932_v13 = vmax.f32 %v1865_v53, 0.0 }
 0x48e   : > { %v1933_v45 = vmax.f32 %v1754_v10, 0.0  ;;  %v1935_v11 = vmax.f32 %v1867_v49, 0.0 }
 0x48f   : > { %v1934_v17 = vmax.f32 %v1756_v20, 0.0  ;;  %v1936_v52 = vmax.f32 %v1869_v7, 0.0 }
 0x490   : > { %v1969_v15 = vpack.c.bf16 %v1933_v45, %v1929_v60  ;;  %v1971_v41 = vpack.c.bf16 %v1935_v11, %v1931_v57 }
 0x491   : > { %v1970_v42 = vpack.c.bf16 %v1934_v17, %v1930_v46  ;;  %v1972_v1 = vpack.c.bf16 %v1936_v52, %v1932_v13  ;;  %v1759_v29 = vpop.f32.mrb[44].mxu0  ;;  %v1872_v3 = vpop.f32.mrb[60].mxu1 }
 0x492   : > { %v1760_v55 = vadd.f32 %v1759_v29, %v4150_v40  ;;  %v1873_v56 = vadd.f32 %v1872_v3, %v4152_v28  ;;  %v1761_v30 = vpop.f32.mrb[45].mxu0  ;;  %v1874_v32 = vpop.f32.mrb[61].mxu1 }
 0x493   : > { %v1762_v43 = vadd.f32 %v1761_v30, %v4154_v22  ;;  %v1875_v39 = vadd.f32 %v1874_v32, %v4156_v18  ;;  %v1763_v14 = vpop.f32.mrb[46].mxu0  ;;  %v1876_v24 = vpop.f32.mrb[62].mxu1  ;;  %2313 = vmatprep.mubr.bf16.mxu0 %v1970_v42  ;;  %2410 = vmatprep.mubr.bf16.mxu1 %v1972_v1 }
 0x494   : > { %v1764_v61 = vadd.f32 %v1763_v14, %v4150_v40  ;;  %v1877_v26 = vadd.f32 %v1876_v24, %v4152_v28  ;;  %v1765_v36 = vpop.f32.mrb[47].mxu0  ;;  %v1878_v54 = vpop.f32.mrb[63].mxu1  ;;  %2314 = vmatmul.mubr.bf16.gmra.mrb[72].mxu0 %v1969_v15  ;;  %2411 = vmatmul.mubr.bf16.gmra.mrb[88].mxu1 %v1971_v41  ;;  %v1937_v23 = vmax.f32 %v1760_v55, 0.0  ;;  %v1939_v0 = vmax.f32 %v1873_v56, 0.0 }
 0x495   : > { %v1766_v62 = vadd.f32 %v1765_v36, %v4154_v22  ;;  %v1879_v2 = vadd.f32 %v1878_v54, %v4156_v18  ;;  %v1938_v21 = vmax.f32 %v1762_v43, 0.0  ;;  %v1940_v8 = vmax.f32 %v1875_v39, 0.0 }
 0x496   : > { %v1941_v38 = vmax.f32 %v1764_v61, 0.0  ;;  %v1943_v27 = vmax.f32 %v1877_v26, 0.0 }
 0x497   : > { %v1942_v9 = vmax.f32 %v1766_v62, 0.0  ;;  %v1944_v47 = vmax.f32 %v1879_v2, 0.0 }
 0x498   : > { %v1973_v40 = vpack.c.bf16 %v1941_v38, %v1937_v23  ;;  %v1975_v25 = vpack.c.bf16 %v1943_v27, %v1939_v0 }
 0x499   : > { %v1974_v28 = vpack.c.bf16 %v1942_v9, %v1938_v21  ;;  %v1976_v53 = vpack.c.bf16 %v1944_v47, %v1940_v8 }
 0x49b   : > { %2321 = vmatprep.mubr.bf16.mxu0 %v1974_v28  ;;  %2418 = vmatprep.mubr.bf16.mxu1 %v1976_v53 }
 0x49c   : > { %2322 = vmatmul.mubr.bf16.gmra.mrb[76].mxu0 %v1973_v40  ;;  %2419 = vmatmul.mubr.bf16.gmra.mrb[92].mxu1 %v1975_v25 }
 0x537   : > { %v2763_v22 = vpop.f32.mrb[48].mxu0  ;;  %v2827_v6 = vpop.f32.mrb[64].mxu1 }
 0x538   : > { %v2764_v18 = vpop.f32.mrb[49].mxu0  ;;  %v2828_v31 = vpop.f32.mrb[65].mxu1 }
 0x539   : > { %v2765_v10 = vadd.f32 %v2764_v18, %v2763_v22  ;;  %v2829_v49 = vadd.f32 %v2828_v31, %v2827_v6  ;;  %v2766_v37 = vpop.f32.mrb[50].mxu0  ;;  %v2830_v63 = vpop.f32.mrb[66].mxu1 }
 0x53a   : > { %v2767_v20 = vpop.f32.mrb[51].mxu0  ;;  %v2831_v7 = vpop.f32.mrb[67].mxu1 }
 0x53b   : > { %v2365_v60 = vadd.f32 %v2829_v49, %v2765_v10  ;;  %v2768_v57 = vadd.f32 %v2767_v20, %v2766_v37  ;;  %v2832_v45 = vadd.f32 %v2831_v7, %v2830_v63 }
 0x53d   : > { %v2427_v11 = vadd.f32 %v2365_v60, %v3700_v44  ;;  %v2368_v46 = vadd.f32 %v2832_v45, %v2768_v57 }
 0x53f   : > { %2443 = vst [vmem:[%s4224_s13] sm:$0xff] %v2427_v11  ;;  %v2428_v13 = vadd.f32 %v2368_v46, %v3708_v51  ;;  %v2769_v17 = vpop.f32.mrb[52].mxu0  ;;  %v2833_v52 = vpop.f32.mrb[68].mxu1 }
 0x540   : > { %v2770_v15 = vpop.f32.mrb[53].mxu0  ;;  %v2834_v41 = vpop.f32.mrb[69].mxu1 }
 0x541   : > { %2444 = vst [vmem:[%s4224_s13 + $0x8] sm:$0xff] %v2428_v13  ;;  %v2771_v42 = vadd.f32 %v2770_v15, %v2769_v17  ;;  %v2835_v1 = vadd.f32 %v2834_v41, %v2833_v52  ;;  %v2772_v29 = vpop.f32.mrb[54].mxu0  ;;  %v2836_v3 = vpop.f32.mrb[70].mxu1 }
 0x542   : > { %v2773_v44 = vpop.f32.mrb[55].mxu0  ;;  %v2837_v55 = vpop.f32.mrb[71].mxu1 }
 0x543   : > { %v2373_v56 = vadd.f32 %v2835_v1, %v2771_v42  ;;  %v2774_v30 = vadd.f32 %v2773_v44, %v2772_v29  ;;  %v2838_v32 = vadd.f32 %v2837_v55, %v2836_v3 }
 0x545   : > { %v2429_v43 = vadd.f32 %v2373_v56, %v3705_v50  ;;  %v2376_v39 = vadd.f32 %v2838_v32, %v2774_v30 }
 0x547   : > { %2445 = vst [vmem:[%s4224_s13 + $0x10] sm:$0xff] %v2429_v43  ;;  %v2430_v51 = vadd.f32 %v2376_v39, %v3716_v59  ;;  %v2775_v14 = vpop.f32.mrb[56].mxu0  ;;  %v2839_v24 = vpop.f32.mrb[72].mxu1 }
 0x548   : > { %v2776_v61 = vpop.f32.mrb[57].mxu0  ;;  %v2840_v26 = vpop.f32.mrb[73].mxu1 }
 0x549   : > { %2446 = vst [vmem:[%s4224_s13 + $0x18] sm:$0xff] %v2430_v51  ;;  %v2777_v36 = vadd.f32 %v2776_v61, %v2775_v14  ;;  %v2841_v54 = vadd.f32 %v2840_v26, %v2839_v24  ;;  %v2778_v62 = vpop.f32.mrb[58].mxu0  ;;  %v2842_v2 = vpop.f32.mrb[74].mxu1 }
 0x54a   : > { %v2779_v23 = vpop.f32.mrb[59].mxu0  ;;  %v2843_v0 = vpop.f32.mrb[75].mxu1 }
 0x54b   : > { %v2381_v38 = vadd.f32 %v2841_v54, %v2777_v36  ;;  %v2780_v27 = vadd.f32 %v2779_v23, %v2778_v62  ;;  %v2844_v50 = vadd.f32 %v2843_v0, %v2842_v2 }
 0x54d   : > { %v2431_v21 = vadd.f32 %v2381_v38, %v3725_v5  ;;  %v2384_v8 = vadd.f32 %v2844_v50, %v2780_v27 }
 0x54f   : > { %2447 = vst [vmem:[%s4224_s13 + $0x20] sm:$0xff] %v2431_v21  ;;  %v2432_v59 = vadd.f32 %v2384_v8, %v3730_v12  ;;  %v2781_v9 = vpop.f32.mrb[60].mxu0  ;;  %v2845_v47 = vpop.f32.mrb[76].mxu1 }
 0x550   : > { %v2782_v40 = vpop.f32.mrb[61].mxu0  ;;  %v2846_v25 = vpop.f32.mrb[77].mxu1 }
 0x551   : > { %2448 = vst [vmem:[%s4224_s13 + $0x28] sm:$0xff] %v2432_v59  ;;  %v2783_v28 = vadd.f32 %v2782_v40, %v2781_v9  ;;  %v2847_v53 = vadd.f32 %v2846_v25, %v2845_v47  ;;  %v2784_v22 = vpop.f32.mrb[62].mxu0  ;;  %v2848_v6 = vpop.f32.mrb[78].mxu1 }
 0x552   : > { %v2785_v18 = vpop.f32.mrb[63].mxu0  ;;  %v2849_v31 = vpop.f32.mrb[79].mxu1 }
 0x553   : > { %v2389_v10 = vadd.f32 %v2847_v53, %v2783_v28  ;;  %v2786_v49 = vadd.f32 %v2785_v18, %v2784_v22  ;;  %v2850_v5 = vadd.f32 %v2849_v31, %v2848_v6 }
 0x555   : > { %v2433_v37 = vadd.f32 %v2389_v10, %v3722_v4  ;;  %v2392_v63 = vadd.f32 %v2850_v5, %v2786_v49 }
 0x557   : > { %2449 = vst [vmem:[%s4224_s13 + $0x30] sm:$0xff] %v2433_v37  ;;  %v2434_v12 = vadd.f32 %v2392_v63, %v3737_v19  ;;  %v2787_v20 = vpop.f32.mrb[64].mxu0  ;;  %v2851_v7 = vpop.f32.mrb[80].mxu1 }
 0x558   : > { %v2788_v60 = vpop.f32.mrb[65].mxu0  ;;  %v2852_v57 = vpop.f32.mrb[81].mxu1 }
 0x559   : > { %2450 = vst [vmem:[%s4224_s13 + $0x38] sm:$0xff] %v2434_v12  ;;  %v2789_v45 = vadd.f32 %v2788_v60, %v2787_v20  ;;  %v2853_v11 = vadd.f32 %v2852_v57, %v2851_v7  ;;  %v2790_v46 = vpop.f32.mrb[66].mxu0  ;;  %v2854_v13 = vpop.f32.mrb[82].mxu1  ;;  %v4348_v20 = vld [vmem:[#allocation15_spill] sm:$0xff] }
 0x55a   : > { %v2791_v17 = vpop.f32.mrb[67].mxu0  ;;  %v2855_v52 = vpop.f32.mrb[83].mxu1 }
 0x55b   : > { %v2397_v15 = vadd.f32 %v2853_v11, %v2789_v45  ;;  %v2792_v41 = vadd.f32 %v2791_v17, %v2790_v46  ;;  %v2856_v4 = vadd.f32 %v2855_v52, %v2854_v13 }
 0x55d   : > { %v2435_v42 = vadd.f32 %v2397_v15, %v3749_v35  ;;  %v2400_v1 = vadd.f32 %v2856_v4, %v2792_v41 }
 0x55f   : > { %2451 = vst [vmem:[%s4224_s13 + $0x40] sm:$0xff] %v2435_v42  ;;  %v2436_v19 = vadd.f32 %v2400_v1, %v3754_v48  ;;  %v2793_v29 = vpop.f32.mrb[68].mxu0  ;;  %v2857_v3 = vpop.f32.mrb[84].mxu1 }
 0x560   : > { %v2794_v44 = vpop.f32.mrb[69].mxu0  ;;  %v2858_v55 = vpop.f32.mrb[85].mxu1 }
 0x561   : > { %2452 = vst [vmem:[%s4224_s13 + $0x48] sm:$0xff] %v2436_v19  ;;  %v2795_v56 = vadd.f32 %v2794_v44, %v2793_v29  ;;  %v2859_v30 = vadd.f32 %v2858_v55, %v2857_v3  ;;  %v2796_v32 = vpop.f32.mrb[70].mxu0  ;;  %v2860_v43 = vpop.f32.mrb[86].mxu1 }
 0x562   : > { %v2797_v39 = vpop.f32.mrb[71].mxu0  ;;  %v2861_v51 = vpop.f32.mrb[87].mxu1 }
 0x563   : > { %v2405_v14 = vadd.f32 %v2859_v30, %v2795_v56  ;;  %v2798_v24 = vadd.f32 %v2797_v39, %v2796_v32  ;;  %v2862_v35 = vadd.f32 %v2861_v51, %v2860_v43 }
 0x565   : > { %v2437_v61 = vadd.f32 %v2405_v14, %v3746_v34  ;;  %v2408_v26 = vadd.f32 %v2862_v35, %v2798_v24 }
 0x567   : > { %2453 = vst [vmem:[%s4224_s13 + $0x50] sm:$0xff] %v2437_v61  ;;  %v2438_v48 = vadd.f32 %v2408_v26, %v3761_v58  ;;  %v2799_v36 = vpop.f32.mrb[72].mxu0  ;;  %v2863_v54 = vpop.f32.mrb[88].mxu1 }
 0x568   : > { %v2800_v62 = vpop.f32.mrb[73].mxu0  ;;  %v2864_v2 = vpop.f32.mrb[89].mxu1 }
 0x569   : > { %2454 = vst [vmem:[%s4224_s13 + $0x58] sm:$0xff] %v2438_v48  ;;  %v2801_v23 = vadd.f32 %v2800_v62, %v2799_v36  ;;  %v2865_v0 = vadd.f32 %v2864_v2, %v2863_v54  ;;  %v2802_v38 = vpop.f32.mrb[74].mxu0  ;;  %v2866_v27 = vpop.f32.mrb[90].mxu1 }
 0x56a   : > { %v2803_v50 = vpop.f32.mrb[75].mxu0  ;;  %v2867_v21 = vpop.f32.mrb[91].mxu1 }
 0x56b   : > { %v2413_v8 = vadd.f32 %v2865_v0, %v2801_v23  ;;  %v2804_v59 = vadd.f32 %v2803_v50, %v2802_v38  ;;  %v2868_v34 = vadd.f32 %v2867_v21, %v2866_v27 }
 0x56d   : > { %v2439_v9 = vadd.f32 %v2413_v8, %v3773_v16  ;;  %v2416_v47 = vadd.f32 %v2868_v34, %v2804_v59 }
 0x56f   : > { %2455 = vst [vmem:[%s4224_s13 + $0x60] sm:$0xff] %v2439_v9  ;;  %v2440_v58 = vadd.f32 %v2416_v47, %v3785_v33  ;;  %v2805_v40 = vpop.f32.mrb[76].mxu0  ;;  %v2869_v25 = vpop.f32.mrb[92].mxu1  ;;  %v4347_v33 = vld [vmem:[#allocation14_spill] sm:$0xff] }
 0x570   : > { %v2806_v28 = vpop.f32.mrb[77].mxu0  ;;  %v2870_v53 = vpop.f32.mrb[93].mxu1 }
 0x571   : > { %2456 = vst [vmem:[%s4224_s13 + $0x68] sm:$0xff] %v2440_v58  ;;  %v2807_v22 = vadd.f32 %v2806_v28, %v2805_v40  ;;  %v2871_v6 = vadd.f32 %v2870_v53, %v2869_v25  ;;  %v2808_v18 = vpop.f32.mrb[78].mxu0  ;;  %v2872_v31 = vpop.f32.mrb[94].mxu1 }
 0x572   : > { %v2809_v10 = vpop.f32.mrb[79].mxu0  ;;  %v2873_v16 = vpop.f32.mrb[95].mxu1 }
 0x573   : > { %v2421_v49 = vadd.f32 %v2871_v6, %v2807_v22  ;;  %v2810_v5 = vadd.f32 %v2809_v10, %v2808_v18  ;;  %v2874_v37 = vadd.f32 %v2873_v16, %v2872_v31 }
 0x575   : > { %v2441_v63 = vadd.f32 %v2421_v49, %v4347_v33  ;;  %v2424_v12 = vadd.f32 %v2874_v37, %v2810_v5 }
 0x577   : > { %2457 = vst [vmem:[%s4224_s13 + $0x70] sm:$0xff] %v2441_v63  ;;  %v2442_v7 = vadd.f32 %v2424_v12, %v4348_v20 }
 0x579   : > { %2458 = vst [vmem:[%s4224_s13 + $0x78] sm:$0xff] %v2442_v7 }
 0x57a   : > { %3338 = shalt.err (!%p3335_p13)
}
 0x57b   : > { %s3339_s20 = scalar_lea.hbm %s4259_s19, 2048  ;;  %s3343_s24 = scalar_lea.hbm %s4318_s10, 4096 }
 0x57c   : > { %p3340_p6 = scmp.ne.s32.totalorder %s4259_s19, %s3339_s20  ;;  %p3344_p7 = scmp.lt.u32.totalorder %s4259_s19, %s4318_s10 }
 0x57d   : > { %p3345_p8 = scmp.lt.u32.totalorder %s3343_s24, %s3339_s20  ;;  %p3347_p0 = scmp.lt.u32.totalorder %s3339_s20, %s4259_s19 }
 0x57e   : > { %p3341_p10 = pnand %p3340_p6, %p4349_p2 }
 0x57f   : > { %p3346_p11 = por %p3345_p8, %p3344_p7 }
 0x580   : > { %p3342_p4 = pneg %p3341_p10 }
 0x581   : > { %p3348_p3 = por %p3347_p0, %p3346_p11 }
 0x583   : > { %p3349_p5 = pnand %p3348_p3, %p3342_p4 }
 0x585   : > { %3352 = shalt.err (!%p3349_p5)
}
 0x586   : > { %s3406_s17 = smov 128   ;;  %s3407_s28 = smov 8  }
 0x587   : > { %2955 = dma.vmem_to_hbm [thread:$0]  (%p4349_p2), %s4261_s23, 2048, %s4259_s19, %s2460_s25, %s3406_s17, %s3406_s17, %s3407_s28  }
 0x588 PF: > { %s4350_s11 = sld [smem:[#allocation12_spill]]  ;;  %s4351_s12 = sld [smem:[#allocation13_spill]] }
 0x589   : > { %p4353_p12 = scmp.ge.s32.totalorder %s3395_s16, 2 }
 0x58e   : > { %s2488_s27 = sand.u32 1, %s4350_s11   ;;  %p4352_p9 = scmp.ne.s32.totalorder %s4351_s12, 0 }
 0x58f   : > { %s2489_s20 = scalar_lea.sflag [#allocation4], %s2488_s27 }
 0x590   : > { %p2969_p1 = pnand %p4353_p12, %p4352_p9 }
 0x592   : > { %3378 = dma.done.wait (!%p2969_p1), %s2489_s20, 2048  }
 0x593   : > { %3380 = vsyncadd (!%p2969_p1), %s2489_s20, 4294965248  ;;  %p24_p13 = scmp.ge.s32.totalorder %s3576_s30, 4   ;;  %s4354_s13 = smov %s3387_s14 }
 0x594   : > { %s4355_s14 = smov %s3391_s15  ;;  %s4356_s15 = smov %s3585_s18 }
 0x595   : > { %s4357_s16 = smov %s3576_s30  ;;  %26 = sbr.rel (!%p24_p13) target bundleno = 6 (0x6), region = 116 }
 0x59c   :  { %2494 = vsyncpa [#allocation3], 1 }
 0x59d   :  { %2496 = vsyncpa [#allocation3 + $0x1], 1 }
 0x59e   :  { %2497 = vsyncpa [#allocation6], 1 }
 0x59f   :  { %2498 = vsyncpa [#allocation4], 1 }
 0x5a0   :  { %2500 = vsyncpa [#allocation4 + $0x1], 1 }

</bundles_post_ra>
